<compile_context>
chip_gen: v7x
topology: tpu7x:2x2x1
jax: 0.10.0
libtpu: 0.0.40
codegen_flags: <defaults>
</compile_context>

<pallas_src>
import jax
import jax.numpy as jnp
from jax.experimental import pallas as pl
from jax.experimental.pallas import tpu as pltpu

BATCH = 2
SEQ = 8
EMB = 384            # Conf.embedding_dim (lane-dense: 3 * 128)
HID = 4 * EMB        # hidden_dim = input_dim * 4
EPS = 1e-5           # PyTorch nn.LayerNorm default eps


def ffn_kernel(x_ref, w1_ref, w2_ref, pk_ref, o_ref):
    """One row-tile of tokens: (TR, E) -> (TR, E)."""
    E = x_ref.shape[-1]
    x = x_ref[...]                                   # (TR, E) f32

    # Packed small vectors: row 0 = b1 (HID); rows 1..3 = b2 / ln_gamma / ln_beta
    # in the first E lanes.  Static slices -> no runtime cost.
    b1 = pk_ref[0:1, :]                              # (1, HID)
    b2 = pk_ref[1:2, :E]                             # (1, E)
    g = pk_ref[2:3, :E]                              # (1, E)
    be = pk_ref[3:4, :E]                             # (1, E)

    # Weights arrive as bf16 (half the HBM bytes of the original f32); upcast
    # once on the VPU and keep the matmul math in f32 — the kernel is DMA-bound,
    # so the compute precision is free.
    w1 = w1_ref[...].astype(jnp.float32)             # (E, HID), pre-transposed
    w2 = w2_ref[...].astype(jnp.float32)             # (HID, E), pre-transposed

    h = jnp.dot(x, w1, preferred_element_type=jnp.float32) + b1
    h = jnp.maximum(h, 0.0)                          # ReLU
    f = jnp.dot(h, w2, preferred_element_type=jnp.float32) + b2

    # LayerNorm: two-pass (numerically safe) stats + rsqrt on the EUP slot.
    mean = jnp.mean(f, axis=-1, keepdims=True)
    c = f - mean
    var = jnp.mean(c * c, axis=-1, keepdims=True)
    inv = jax.lax.rsqrt(var + EPS)
    o_ref[...] = (x + c * inv * g + be).astype(o_ref.dtype)   # residual + LN(FFN(x))


def prepare_params(params):
    """One-time param prep (outside the hot path): transpose, bf16-cast, pack."""
    hid, E = params["w1"].shape
    packed = jnp.zeros((4, hid), jnp.float32)
    packed = packed.at[0, :].set(params["b1"])
    packed = packed.at[1, :E].set(params["b2"])
    packed = packed.at[2, :E].set(params["ln_g"])
    packed = packed.at[3, :E].set(params["ln_b"])
    return {
        "w1t": params["w1"].T.astype(jnp.bfloat16),   # (E, HID)
        "w2t": params["w2"].T.astype(jnp.bfloat16),   # (HID, E)
        "packed": packed,                             # (4, HID) f32
    }


def ffn_forward(x_ble, prep, *, row_tile=None):
    """x_ble: (B, L, E) float32 -> (B, L, E) float32."""
    B, L, E = x_ble.shape
    R = B * L
    w1t, w2t, packed = prep["w1t"], prep["w2t"], prep["packed"]
    hid = w1t.shape[1]

    if row_tile is None:
        # Cap at 128 so the live (row_tile, HID) f32 intermediate stays bounded
        # (avoids spill once the kernel stops being DMA-bound at larger R).
        row_tile = R if R <= 128 else 128
    row_tile = max(8, ((row_tile + 7) // 8) * 8)      # f32 sublane multiple

    x2 = x_ble.reshape(R, E)                          # contiguous reshape, no transpose
    R_pad = pl.cdiv(R, row_tile) * row_tile
    if R_pad != R:                                    # pad last tile; sliced off below
        x2 = jnp.pad(x2, ((0, R_pad - R), (0, 0)))

    grid = (R_pad // row_tile,)
    cost = pl.CostEstimate(
        flops=2 * 2 * R_pad * E * hid,                # two matmuls
        transcendentals=R_pad,                        # one rsqrt per row
        bytes_accessed=(x2.size * 4 + R_pad * E * 4   # x in, y out (f32)
                        + w1t.size * 2 + w2t.size * 2  # bf16 weights
                        + packed.size * 4),
    )

    out = pl.pallas_call(
        ffn_kernel,
        out_shape=jax.ShapeDtypeStruct((R_pad, E), jnp.float32),
        grid=grid,
        in_specs=[
            pl.BlockSpec((row_tile, E), lambda i: (i, 0)),         # x row-tile
            pl.BlockSpec((E, hid), lambda i: (0, 0),               # w1t (constant index:
                         pipeline_mode=pl.Buffered(1)),            #  single-buffered)
            pl.BlockSpec((hid, E), lambda i: (0, 0),
                         pipeline_mode=pl.Buffered(1)),            # w2t
            pl.BlockSpec((4, hid), lambda i: (0, 0),
                         pipeline_mode=pl.Buffered(1)),            # packed biases / LN
        ],
        out_specs=pl.BlockSpec((row_tile, E), lambda i: (i, 0)),
        compiler_params=pltpu.CompilerParams(
            # Row tiles are independent -> shards across v7x's 2 TensorCores
            # once R > row_tile; at R=16 the grid is a single step.
            dimension_semantics=("parallel",),
            vmem_limit_bytes=32 * 1024 * 1024,
        ),
        cost_estimate=cost,
    )(x2, w1t, w2t, packed)
    return out[:R].reshape(B, L, E)


def ffn_reference(x, params, *, quantize_weights):
    """Pure-JAX reference; optionally uses the same bf16-quantized weight values."""
    w1, w2 = params["w1"], params["w2"]
    if quantize_weights:
        w1 = w1.astype(jnp.bfloat16).astype(jnp.float32)
        w2 = w2.astype(jnp.bfloat16).astype(jnp.float32)
    h = jax.nn.relu(jnp.einsum("ble,he->blh", x, w1) + params["b1"])
    f = jnp.einsum("blh,eh->ble", h, w2) + params["b2"]
    mean = jnp.mean(f, axis=-1, keepdims=True)
    var = jnp.mean((f - mean) ** 2, axis=-1, keepdims=True)
    y = (f - mean) * jax.lax.rsqrt(var + EPS) * params["ln_g"] + params["ln_b"]
    return x + y


def init_params(key):
    ks = jax.random.split(key, 4)
    f32 = jnp.float32
    return {
        "w1": 0.05 * jax.random.normal(ks[0], (HID, EMB), f32),   # Linear(E, 4E).weight
        "b1": 0.01 * jax.random.normal(ks[1], (HID,), f32),
        "w2": 0.05 * jax.random.normal(ks[2], (EMB, HID), f32),   # Linear(4E, E).weight
        "b2": 0.01 * jax.random.normal(ks[3], (EMB,), f32),
        "ln_g": jnp.ones((EMB,), f32),                            # LayerNorm(384) default init
        "ln_b": jnp.zeros((EMB,), f32),
    }


if __name__ == "__main__":
    key = jax.random.PRNGKey(0)
    pkey, xkey = jax.random.split(key)
    params = init_params(pkey)
    prep = prepare_params(params)        # one-time: transpose + bf16 + bias packing
    x = jax.random.normal(xkey, (BATCH, SEQ, EMB), jnp.float32)

    out = jax.block_until_ready(jax.jit(ffn_forward)(x, prep))

    # Exact check vs a reference using the same bf16-quantized weight values.
    ref_q = ffn_reference(x, params, quantize_weights=True)
    # Semantics check vs the full-f32 PyTorch module math (bf16 weight storage
    # introduces only a small, bounded perturbation).
    ref_f = ffn_reference(x, params, quantize_weights=False)

    assert out.shape == (BATCH, SEQ, EMB)
    assert jnp.allclose(out, ref_q, rtol=1e-3, atol=1e-3), "mismatch vs bf16-weight reference"
    assert jnp.allclose(out, ref_f, rtol=2e-2, atol=2e-2), "drifted from f32 module semantics"
    print("KERNEL_OK")
</pallas_src>

<mosaic_0001>
module attributes {stable_mosaic.version = 11 : i64} {
  func.func @ffn_kernel(%arg0: i32, %arg1: memref<16x384xf32, #tpu.memory_space<vmem>>, %arg2: memref<384x1536xbf16, #tpu.memory_space<vmem>>, %arg3: memref<1536x384xbf16, #tpu.memory_space<vmem>>, %arg4: memref<4x1536xf32, #tpu.memory_space<vmem>>, %arg5: memref<16x384xf32, #tpu.memory_space<vmem>>) attributes {dimension_semantics = [#tpu.dimension_semantics<parallel>], iteration_bounds = array<i64: 1>, scalar_prefetch = 0 : i64, scratch_operands = 0 : i64, tpu.core_type = #tpu.core_type<tc>, window_params = [{transform_indices = @transform_0, window_bounds = array<i64: 16, 384>}, {pipeline_mode = #tpu.pipeline_mode<synchronous>, transform_indices = @transform_1, window_bounds = array<i64: 384, 1536>}, {pipeline_mode = #tpu.pipeline_mode<synchronous>, transform_indices = @transform_2, window_bounds = array<i64: 1536, 384>}, {pipeline_mode = #tpu.pipeline_mode<synchronous>, transform_indices = @transform_3, window_bounds = array<i64: 4, 1536>}, {transform_indices = @transform_4, window_bounds = array<i64: 16, 384>}]} {
    %c0 = arith.constant 0 : index
    %c0_0 = arith.constant 0 : index
    %0 = vector.load %arg1[%c0, %c0_0] : memref<16x384xf32, #tpu.memory_space<vmem>>, vector<16x384xf32>
    %c0_1 = arith.constant 0 : index
    %c0_2 = arith.constant 0 : index
    %1 = vector.load %arg4[%c0_1, %c0_2] : memref<4x1536xf32, #tpu.memory_space<vmem>>, vector<1x1536xf32>
    %c1 = arith.constant 1 : index
    %c0_3 = arith.constant 0 : index
    %2 = vector.load %arg4[%c1, %c0_3] : memref<4x1536xf32, #tpu.memory_space<vmem>>, vector<1x384xf32>
    %c2 = arith.constant 2 : index
    %c0_4 = arith.constant 0 : index
    %3 = vector.load %arg4[%c2, %c0_4] : memref<4x1536xf32, #tpu.memory_space<vmem>>, vector<1x384xf32>
    %c3 = arith.constant 3 : index
    %c0_5 = arith.constant 0 : index
    %4 = vector.load %arg4[%c3, %c0_5] : memref<4x1536xf32, #tpu.memory_space<vmem>>, vector<1x384xf32>
    %c0_6 = arith.constant 0 : index
    %c0_7 = arith.constant 0 : index
    %5 = vector.load %arg2[%c0_6, %c0_7] : memref<384x1536xbf16, #tpu.memory_space<vmem>>, vector<384x1536xbf16>
    %6 = arith.extf %5 : vector<384x1536xbf16> to vector<384x1536xf32>
    %c0_8 = arith.constant 0 : index
    %c0_9 = arith.constant 0 : index
    %7 = vector.load %arg3[%c0_8, %c0_9] : memref<1536x384xbf16, #tpu.memory_space<vmem>>, vector<1536x384xbf16>
    %8 = arith.extf %7 : vector<1536x384xbf16> to vector<1536x384xf32>
    %cst = arith.constant dense<0.000000e+00> : vector<16x1536xf32>
    %9 = tpu.matmul %0, %6, %cst {dimension_numbers = #tpu.dot_dimension_numbers<[1], [0], [0], [1], [0, 0, 1, 1], [], []>} : vector<16x384xf32>, vector<384x1536xf32>, vector<16x1536xf32> -> vector<16x1536xf32>
    %10 = vector.broadcast %1 : vector<1x1536xf32> to vector<16x1536xf32>
    %11 = arith.addf %9, %10 : vector<16x1536xf32>
    %cst_10 = arith.constant 0.000000e+00 : f32
    %12 = vector.broadcast %cst_10 : f32 to vector<16x1536xf32>
    %13 = arith.maximumf %11, %12 : vector<16x1536xf32>
    %cst_11 = arith.constant dense<0.000000e+00> : vector<16x384xf32>
    %14 = tpu.matmul %13, %8, %cst_11 {dimension_numbers = #tpu.dot_dimension_numbers<[1], [0], [0], [1], [0, 0, 1, 1], [], []>} : vector<16x1536xf32>, vector<1536x384xf32>, vector<16x384xf32> -> vector<16x384xf32>
    %15 = vector.broadcast %2 : vector<1x384xf32> to vector<16x384xf32>
    %16 = arith.addf %14, %15 : vector<16x384xf32>
    %cst_12 = arith.constant dense<0.000000e+00> : vector<16xf32>
    %17 = vector.multi_reduction <add>, %16, %cst_12 [1] : vector<16x384xf32> to vector<16xf32>
    %18 = vector.shape_cast %17 : vector<16xf32> to vector<16x1xf32>
    %cst_13 = arith.constant 3.840000e+02 : f32
    %19 = vector.broadcast %cst_13 : f32 to vector<16x1xf32>
    %20 = arith.divf %18, %19 : vector<16x1xf32>
    %21 = vector.broadcast %20 : vector<16x1xf32> to vector<16x384xf32>
    %22 = arith.subf %16, %21 : vector<16x384xf32>
    %23 = arith.mulf %22, %22 : vector<16x384xf32>
    %cst_14 = arith.constant dense<0.000000e+00> : vector<16xf32>
    %24 = vector.multi_reduction <add>, %23, %cst_14 [1] : vector<16x384xf32> to vector<16xf32>
    %25 = vector.shape_cast %24 : vector<16xf32> to vector<16x1xf32>
    %cst_15 = arith.constant 3.840000e+02 : f32
    %26 = vector.broadcast %cst_15 : f32 to vector<16x1xf32>
    %27 = arith.divf %25, %26 : vector<16x1xf32>
    %cst_16 = arith.constant 9.99999974E-6 : f32
    %28 = vector.broadcast %cst_16 : f32 to vector<16x1xf32>
    %29 = arith.addf %27, %28 : vector<16x1xf32>
    %30 = math.rsqrt %29 : vector<16x1xf32>
    %31 = vector.broadcast %30 : vector<16x1xf32> to vector<16x384xf32>
    %32 = arith.mulf %22, %31 : vector<16x384xf32>
    %33 = vector.broadcast %3 : vector<1x384xf32> to vector<16x384xf32>
    %34 = arith.mulf %32, %33 : vector<16x384xf32>
    %35 = arith.addf %0, %34 : vector<16x384xf32>
    %36 = vector.broadcast %4 : vector<1x384xf32> to vector<16x384xf32>
    %37 = arith.addf %35, %36 : vector<16x384xf32>
    %c0_17 = arith.constant 0 : index
    %c0_18 = arith.constant 0 : index
    %38 = vector.load %arg5[%c0_17, %c0_18] : memref<16x384xf32, #tpu.memory_space<vmem>>, vector<16x384xf32>
    tpu.vector_store %arg5[%c0_17, %c0_18], %37 {strides = array<i32>} : memref<16x384xf32, #tpu.memory_space<vmem>>, vector<16x384xf32>,
    return
  }
  func.func @transform_0(%arg0: i32) -> (i32, i32) {
    %c0_i32 = arith.constant 0 : i32
    %c0_i32_0 = arith.constant 0 : i32
    return %arg0, %c0_i32 : i32, i32
  }
  func.func @transform_1(%arg0: i32) -> (i32, i32) {
    %c0_i32 = arith.constant 0 : i32
    %c0_i32_0 = arith.constant 0 : i32
    %c0_i32_1 = arith.constant 0 : i32
    return %c0_i32, %c0_i32_0 : i32, i32
  }
  func.func @transform_2(%arg0: i32) -> (i32, i32) {
    %c0_i32 = arith.constant 0 : i32
    %c0_i32_0 = arith.constant 0 : i32
    %c0_i32_1 = arith.constant 0 : i32
    return %c0_i32, %c0_i32_0 : i32, i32
  }
  func.func @transform_3(%arg0: i32) -> (i32, i32) {
    %c0_i32 = arith.constant 0 : i32
    %c0_i32_0 = arith.constant 0 : i32
    %c0_i32_1 = arith.constant 0 : i32
    return %c0_i32, %c0_i32_0 : i32, i32
  }
  func.func @transform_4(%arg0: i32) -> (i32, i32) {
    %c0_i32 = arith.constant 0 : i32
    %c0_i32_0 = arith.constant 0 : i32
    return %arg0, %c0_i32 : i32, i32
  }
}

</mosaic_0001>

<bundles_post_ra>
// kernel: ffn_forward.1
= control target key start
LH: loop header
LB: loop body
LE: loop exit
PB: predicated region body
PF: predicated region fallthrough
CT: control target
= control target key end

     0   :  { %9 = vsyncpa [#allocation3], 0  ;;  %s7343_s0 = inlined_call_operand.hbm [shape: f32[16,384], index: 0, kind: input, shape index: {}]   ;;  %s7344_s1 = inlined_call_operand.hbm [shape: bf16[384,1536], index: 1, kind: input, shape index: {}]   ;;  %s7345_s2 = inlined_call_operand.hbm [shape: bf16[1536,384], index: 2, kind: input, shape index: {}]   ;;  %s7346_s3 = inlined_call_operand.hbm [shape: f32[4,1536], index: 3, kind: input, shape index: {}]   ;;  %s7347_s4 = inlined_call_operand.hbm [shape: f32[16,384], index: 4, kind: output, shape index: {}]  }
   0x1   :  { %10 = vsyncpa [#allocation6], 0 }
   0x2   :  { %11 = vsyncpa [#allocation9], 0 }
   0x3   :  { %12 = vsyncpa [#allocation4], 0  ;;  %s6957_s15 = smov [#allocation5]   ;;  %s6839_s19 = scalar_lea.hbm %s7344_s1, 36864 }
   0x4   :  { %s30_s16 = sshll.u32 %s6957_s15, 4  ;;  %p6840_p0 = scmp.ne.s32.totalorder %s7344_s1, %s6839_s19  ;;  %s31_s16 = int_to_ptr.vmem [resolvable:$true] %s30_s16 }
   0x5   :  { %p6843_p1 = scmp.lt.u32.totalorder %s6839_s19, %s7344_s1 }
   0x7   :  { %p6845_p2 = pnand %p6843_p1, %p6840_p0 }
   0x9   :  { %6848 = shalt.err (!%p6845_p2)
}
   0xa   :  { %s6849_s24 = scalar_lea.vmem %s31_s16, 36864  ;;  %p6854_p4 = scmp.lt.s32.totalorder %s31_s16, %s31_s16 }
   0xb   :  { %p6850_p3 = scmp.ne.s32.totalorder %s31_s16, %s6849_s24  ;;  %p6855_p5 = scmp.lt.s32.totalorder %s6849_s24, %s6849_s24 }
   0xd   :  { %p6856_p6 = por %p6855_p5, %p6854_p4 }
   0xf   :  { %p6857_p7 = pnand %p6856_p6, %p6850_p3 }
  0x11   :  { %6860 = shalt.err (!%p6857_p7)
}
  0x12   :  { %s6958_s25 = smov 768   ;;  %s6959_s26 = smov 48  }
  0x13   :  { %36 = dma.hbm_to_vmem [thread:$0]  %s7344_s1, 36864, %s31_s16, [#allocation6], %s6958_s25, %s6958_s25, %s6959_s26  }
  0x14   :  { %s6960_s29 = smov [#allocation2]   ;;  %s6861_s7 = scalar_lea.hbm %s7343_s0, 768 }
  0x15   :  { %s18_s30 = sshll.u32 %s6960_s29, 4  ;;  %p6862_p8 = scmp.ne.s32.totalorder %s7343_s0, %s6861_s7  ;;  %s19_s30 = int_to_ptr.vmem [resolvable:$true] %s18_s30 }
  0x16   :  { %p6865_p9 = scmp.lt.u32.totalorder %s6861_s7, %s7343_s0 }
  0x18   :  { %p6867_p10 = pnand %p6865_p9, %p6862_p8 }
  0x1a   :  { %6870 = shalt.err (!%p6867_p10)
}
  0x1b   :  { %s6871_s12 = scalar_lea.vmem %s19_s30, 768  ;;  %p6876_p12 = scmp.lt.s32.totalorder %s19_s30, %s19_s30 }
  0x1c   :  { %p6872_p11 = scmp.ne.s32.totalorder %s19_s30, %s6871_s12  ;;  %p6877_p13 = scmp.lt.s32.totalorder %s6871_s12, %s6871_s12 }
  0x1e   :  { %p6878_p0 = por %p6877_p13, %p6876_p12 }
  0x20   :  { %p6879_p1 = pnand %p6878_p0, %p6872_p11 }
  0x22   :  { %6882 = shalt.err (!%p6879_p1)
}
  0x23   :  { %s6961_s1 = smov 384   ;;  %s6962_s13 = smov 24  }
  0x24   :  { %24 = dma.hbm_to_vmem [thread:$0]  %s7343_s0, 768, %s19_s30, [#allocation3], %s6961_s1, %s6961_s1, %s6962_s13  }
  0x25   :  { %s6963_s16 = smov [#allocation7]   ;;  %s6883_s20 = scalar_lea.hbm %s7345_s2, 36864 }
  0x26   :  { %s42_s17 = sshll.u32 %s6963_s16, 4  ;;  %p6884_p2 = scmp.ne.s32.totalorder %s7345_s2, %s6883_s20  ;;  %s43_s17 = int_to_ptr.vmem [resolvable:$true] %s42_s17 }
  0x27   :  { %p6887_p3 = scmp.lt.u32.totalorder %s6883_s20, %s7345_s2 }
  0x29   :  { %p6889_p4 = pnand %p6887_p3, %p6884_p2 }
  0x2b   :  { %6892 = shalt.err (!%p6889_p4)
}
  0x2c   :  { %s6893_s25 = scalar_lea.vmem %s43_s17, 36864  ;;  %p6898_p6 = scmp.lt.s32.totalorder %s43_s17, %s43_s17 }
  0x2d   :  { %p6894_p5 = scmp.ne.s32.totalorder %s43_s17, %s6893_s25  ;;  %p6899_p7 = scmp.lt.s32.totalorder %s6893_s25, %s6893_s25 }
  0x2f   :  { %p6900_p8 = por %p6899_p7, %p6898_p6 }
  0x31   :  { %p6901_p9 = pnand %p6900_p8, %p6894_p5 }
  0x33   :  { %6904 = shalt.err (!%p6901_p9)
}
  0x34   :  { %s6964_s0 = smov 192   ;;  %s6965_s26 = smov 12  }
  0x35   :  { %48 = dma.hbm_to_vmem [thread:$0]  %s7345_s2, 36864, %s43_s17, [#allocation6], %s6964_s0, %s6964_s0, %s6965_s26  }
  0x36   :  { %s6966_s29 = smov [#allocation8]   ;;  %s6905_s7 = scalar_lea.hbm %s7346_s3, 768 }
  0x37   :  { %s55_s30 = sshll.u32 %s6966_s29, 4  ;;  %p6906_p10 = scmp.ne.s32.totalorder %s7346_s3, %s6905_s7  ;;  %s56_s30 = int_to_ptr.vmem [resolvable:$true] %s55_s30 }
  0x38   :  { %p6909_p11 = scmp.lt.u32.totalorder %s6905_s7, %s7346_s3 }
  0x3a   :  { %p6911_p12 = pnand %p6909_p11, %p6906_p10 }
  0x3c   :  { %6914 = shalt.err (!%p6911_p12)
}
  0x3d   :  { %s6915_s12 = scalar_lea.vmem %s56_s30, 768  ;;  %p6920_p0 = scmp.lt.s32.totalorder %s56_s30, %s56_s30 }
  0x3e   :  { %p6916_p13 = scmp.ne.s32.totalorder %s56_s30, %s6915_s12  ;;  %p6921_p1 = scmp.lt.s32.totalorder %s6915_s12, %s6915_s12 }
  0x40   :  { %p6922_p2 = por %p6921_p1, %p6920_p0 }
  0x42   :  { %p6923_p3 = pnand %p6922_p2, %p6916_p13 }
  0x44   :  { %6926 = shalt.err (!%p6923_p3)
}
  0x45   :  { %58 = dma.hbm_to_vmem [thread:$0]  %s7346_s3, 768, %s56_s30, [#allocation9]  }
  0x46   :  { %6949 = dma.done.wait [#allocation3], 768  }
  0x47   :  { %6950 = vsyncadd [#allocation3], 4294966528 }
  0x48   :  { %6951 = dma.done.wait [#allocation6], 73728  }
  0x49   :  { %6952 = vsyncadd [#allocation6], 4294893568 }
  0x4a   :  { %6953 = dma.done.wait [#allocation9], 768  }
  0x4b   :  { %6954 = vsyncadd [#allocation9], 4294966528  ;;  %v6006_v0 = vld [vmem:[#allocation5 + $0x4] ss:$48 sps:$4 sm:$0xff]   ;;  %v6008_v1 = vld [vmem:[#allocation5] ss:$48 sps:$4 sm:$0xff]  }
  0x4c   :  { %4195 = vmatprep.subr.bf16.mxu1 %v6006_v0  ;;  %v6009_v2 = vld [vmem:[#allocation5 + $0x64] ss:$48 sps:$4 sm:$0xff]   ;;  %v6011_v3 = vld [vmem:[#allocation5 + $0x60] ss:$48 sps:$4 sm:$0xff]   ;;  %v7045_v19 = vld [vmem:[#allocation2 + $0x8] sm:$0xff]  ;;  %s6968_s3 = smov [#allocation10]  }
  0x4d   :  { %4197 = vmatpush1.bf16.msra.mxu1 %v6008_v1  ;;  %v6012_v4 = vld [vmem:[#allocation5 + $0xc4] ss:$48 sps:$4 sm:$0xff]   ;;  %v6014_v5 = vld [vmem:[#allocation5 + $0xc0] ss:$48 sps:$4 sm:$0xff]   ;;  %2036 = vmatprep.mubr.f32.mxu1 %v7045_v19  ;;  %v7055_v0 = vld [vmem:[#allocation2 + $0x18] sm:$0xff]  ;;  %s3952_s15 = sshll.u32 %s6968_s3, 4  ;;  %s3953_s15 = int_to_ptr.vmem [resolvable:$true] %s3952_s15 }
  0x4e   :  { %4199 = vmatprep.subr.bf16.mxu1 %v6009_v2  ;;  %v6015_v6 = vld [vmem:[#allocation5 + $0x124] ss:$48 sps:$4 sm:$0xff]   ;;  %v6017_v7 = vld [vmem:[#allocation5 + $0x120] ss:$48 sps:$4 sm:$0xff]   ;;  %2344 = vmatprep.mubr.f32.mxu0 %v7045_v19  ;;  %s6927_s16 = scalar_lea.vmem %s3953_s15, 768  ;;  %p6932_p5 = scmp.lt.s32.totalorder %s3953_s15, %s3953_s15 }
  0x4f   :  { %v6018_v8 = vld [vmem:[#allocation5 + $0x184] ss:$48 sps:$4 sm:$0xff]   ;;  %v6020_v9 = vld [vmem:[#allocation5 + $0x180] ss:$48 sps:$4 sm:$0xff]   ;;  %p6928_p4 = scmp.ne.s32.totalorder %s3953_s15, %s6927_s16  ;;  %p6933_p6 = scmp.lt.s32.totalorder %s6927_s16, %s6927_s16 }
  0x50   :  { %v6021_v10 = vld [vmem:[#allocation5 + $0x1e4] ss:$48 sps:$4 sm:$0xff]   ;;  %v6023_v11 = vld [vmem:[#allocation5 + $0x1e0] ss:$48 sps:$4 sm:$0xff]  }
  0x51   :  { %4201 = vmatpush1.bf16.msra.mxu1 %v6011_v3  ;;  %v6024_v12 = vld [vmem:[#allocation5 + $0x244] ss:$48 sps:$4 sm:$0xff]   ;;  %v6053_v14 = vld [vmem:[#allocation5 + $0x10] ss:$48 sps:$4 sm:$0xff]   ;;  %p6934_p7 = por %p6933_p6, %p6932_p5 }
  0x52   :  { %4203 = vmatprep.subr.bf16.mxu1 %v6012_v4  ;;  %v6051_v13 = vld [vmem:[#allocation5 + $0x14] ss:$48 sps:$4 sm:$0xff]   ;;  %v6026_v15 = vld [vmem:[#allocation5 + $0x240] ss:$48 sps:$4 sm:$0xff]  }
  0x53   :  { %v6027_v16 = vld [vmem:[#allocation5 + $0x2a4] ss:$48 sps:$4 sm:$0xff]   ;;  %4387 = vmatprep.subr.bf16.mxu0 %v6051_v13  ;;  %v6059_v18 = vld [vmem:[#allocation5 + $0x70] ss:$48 sps:$4 sm:$0xff]   ;;  %p6935_p8 = pnand %p6934_p7, %p6928_p4 }
  0x54   :  { %4389 = vmatpush1.bf16.msra.mxu0 %v6053_v14  ;;  %v6057_v17 = vld [vmem:[#allocation5 + $0x74] ss:$48 sps:$4 sm:$0xff]   ;;  %v6029_v20 = vld [vmem:[#allocation5 + $0x2a0] ss:$48 sps:$4 sm:$0xff]  }
  0x55   :  { %4205 = vmatpush1.bf16.msra.mxu1 %v6014_v5  ;;  %4391 = vmatprep.subr.bf16.mxu0 %v6057_v17  ;;  %v6063_v21 = vld [vmem:[#allocation5 + $0xd4] ss:$48 sps:$4 sm:$0xff]   ;;  %v6065_v22 = vld [vmem:[#allocation5 + $0xd0] ss:$48 sps:$4 sm:$0xff]   ;;  %v6967_v5 = vmov 0.0  }
  0x56   :  { %4207 = vmatprep.subr.bf16.mxu1 %v6015_v6  ;;  %v6030_v23 = vld [vmem:[#allocation5 + $0x304] ss:$48 sps:$4 sm:$0xff]   ;;  %v6032_v25 = vld [vmem:[#allocation5 + $0x300] ss:$48 sps:$4 sm:$0xff]  }
  0x57   :  { %v6069_v24 = vld [vmem:[#allocation5 + $0x134] ss:$48 sps:$4 sm:$0xff]   ;;  %v6071_v26 = vld [vmem:[#allocation5 + $0x130] ss:$48 sps:$4 sm:$0xff]  }
  0x58   :  { %4393 = vmatpush1.bf16.msra.mxu0 %v6059_v18  ;;  %v6033_v27 = vld [vmem:[#allocation5 + $0x364] ss:$48 sps:$4 sm:$0xff]   ;;  %v6035_v29 = vld [vmem:[#allocation5 + $0x360] ss:$48 sps:$4 sm:$0xff]  }
  0x59   :  { %4209 = vmatpush1.bf16.msra.mxu1 %v6017_v7  ;;  %4395 = vmatprep.subr.bf16.mxu0 %v6063_v21  ;;  %v6075_v28 = vld [vmem:[#allocation5 + $0x194] ss:$48 sps:$4 sm:$0xff]   ;;  %v6077_v30 = vld [vmem:[#allocation5 + $0x190] ss:$48 sps:$4 sm:$0xff]  }
  0x5a   :  { %4211 = vmatprep.subr.bf16.mxu1 %v6018_v8  ;;  %v6036_v31 = vld [vmem:[#allocation5 + $0x3c4] ss:$48 sps:$4 sm:$0xff]   ;;  %v6038_v33 = vld [vmem:[#allocation5 + $0x3c0] ss:$48 sps:$4 sm:$0xff]  }
  0x5b   :  { %v6081_v32 = vld [vmem:[#allocation5 + $0x1f4] ss:$48 sps:$4 sm:$0xff]   ;;  %v6083_v34 = vld [vmem:[#allocation5 + $0x1f0] ss:$48 sps:$4 sm:$0xff]  }
  0x5c   :  { %4397 = vmatpush1.bf16.msra.mxu0 %v6065_v22  ;;  %v6039_v35 = vld [vmem:[#allocation5 + $0x424] ss:$48 sps:$4 sm:$0xff]   ;;  %v6041_v37 = vld [vmem:[#allocation5 + $0x420] ss:$48 sps:$4 sm:$0xff]  }
  0x5d   :  { %4213 = vmatpush1.bf16.msra.mxu1 %v6020_v9  ;;  %4399 = vmatprep.subr.bf16.mxu0 %v6069_v24  ;;  %v6087_v36 = vld [vmem:[#allocation5 + $0x254] ss:$48 sps:$4 sm:$0xff]   ;;  %v6089_v39 = vld [vmem:[#allocation5 + $0x250] ss:$48 sps:$4 sm:$0xff]  }
  0x5e   :  { %4215 = vmatprep.subr.bf16.mxu1 %v6021_v10  ;;  %v6042_v38 = vld [vmem:[#allocation5 + $0x484] ss:$48 sps:$4 sm:$0xff]   ;;  %v6044_v41 = vld [vmem:[#allocation5 + $0x480] ss:$48 sps:$4 sm:$0xff]  }
  0x5f   :  { %v6093_v40 = vld [vmem:[#allocation5 + $0x2b4] ss:$48 sps:$4 sm:$0xff]   ;;  %v6095_v43 = vld [vmem:[#allocation5 + $0x2b0] ss:$48 sps:$4 sm:$0xff]  }
  0x60   :  { %4401 = vmatpush1.bf16.msra.mxu0 %v6071_v26  ;;  %v6045_v42 = vld [vmem:[#allocation5 + $0x4e4] ss:$48 sps:$4 sm:$0xff]   ;;  %v6047_v45 = vld [vmem:[#allocation5 + $0x4e0] ss:$48 sps:$4 sm:$0xff]  }
  0x61   :  { %4217 = vmatpush1.bf16.msra.mxu1 %v6023_v11  ;;  %4403 = vmatprep.subr.bf16.mxu0 %v6075_v28  ;;  %v6099_v44 = vld [vmem:[#allocation5 + $0x314] ss:$48 sps:$4 sm:$0xff]   ;;  %v6101_v46 = vld [vmem:[#allocation5 + $0x310] ss:$48 sps:$4 sm:$0xff]  }
  0x62   :  { %4219 = vmatprep.subr.bf16.mxu1 %v6024_v12  ;;  %v6048_v47 = vld [vmem:[#allocation5 + $0x544] ss:$48 sps:$4 sm:$0xff]   ;;  %v6050_v49 = vld [vmem:[#allocation5 + $0x540] ss:$48 sps:$4 sm:$0xff]  }
  0x63   :  { %v6105_v48 = vld [vmem:[#allocation5 + $0x374] ss:$48 sps:$4 sm:$0xff]   ;;  %v6107_v50 = vld [vmem:[#allocation5 + $0x370] ss:$48 sps:$4 sm:$0xff]  }
  0x64   :  { %4405 = vmatpush1.bf16.msra.mxu0 %v6077_v30  ;;  %v6054_v51 = vld [vmem:[#allocation5 + $0x5a4] ss:$48 sps:$4 sm:$0xff]   ;;  %v6056_v53 = vld [vmem:[#allocation5 + $0x5a0] ss:$48 sps:$4 sm:$0xff]  }
  0x65   :  { %4221 = vmatpush1.bf16.msra.mxu1 %v6026_v15  ;;  %4407 = vmatprep.subr.bf16.mxu0 %v6081_v32  ;;  %v6111_v52 = vld [vmem:[#allocation5 + $0x3d4] ss:$48 sps:$4 sm:$0xff]   ;;  %v6113_v54 = vld [vmem:[#allocation5 + $0x3d0] ss:$48 sps:$4 sm:$0xff]   ;;  %v6114_v32 = vld [vmem:[#allocation5 + $0x6c] ss:$48 sps:$4 sm:$0xff]  }
  0x66   :  { %4223 = vmatprep.subr.bf16.mxu1 %v6027_v16  ;;  %v6060_v55 = vld [vmem:[#allocation5 + $0x604] ss:$48 sps:$4 sm:$0xff]   ;;  %v6062_v57 = vld [vmem:[#allocation5 + $0x600] ss:$48 sps:$4 sm:$0xff]  }
  0x67   :  { %v6117_v56 = vld [vmem:[#allocation5 + $0x434] ss:$48 sps:$4 sm:$0xff]   ;;  %v6119_v61 = vld [vmem:[#allocation5 + $0x430] ss:$48 sps:$4 sm:$0xff]  }
  0x68   :  { %4409 = vmatpush1.bf16.msra.mxu0 %v6083_v34  ;;  %v7049_v58 = vld [vmem:[#allocation2] sm:$0xff]  ;;  %v7063_v30 = vld [vmem:[#allocation2 + $0x10] sm:$0xff] }
  0x69   :  { %4225 = vmatpush1.bf16.msra.mxu1 %v6029_v20  ;;  %4411 = vmatprep.subr.bf16.mxu0 %v6087_v36  ;;  %v6066_v59 = vld [vmem:[#allocation5 + $0x664] ss:$48 sps:$4 sm:$0xff]   ;;  %v6068_v63 = vld [vmem:[#allocation5 + $0x660] ss:$48 sps:$4 sm:$0xff]   ;;  %v6116_v36 = vld [vmem:[#allocation5 + $0x68] ss:$48 sps:$4 sm:$0xff]  }
  0x6a   :  { %4227 = vmatprep.subr.bf16.mxu1 %v6030_v23  ;;  %v7051_v60 = vld [vmem:[#allocation2 + $0x20] sm:$0xff] }
  0x6b   :  { %v6123_v62 = vld [vmem:[#allocation5 + $0x494] ss:$48 sps:$4 sm:$0xff]   ;;  %v6125_v2 = vld [vmem:[#allocation5 + $0x490] ss:$48 sps:$4 sm:$0xff]  }
  0x6c   :  { %4413 = vmatpush1.bf16.msra.mxu0 %v6089_v39  ;;  %v6072_v1 = vld [vmem:[#allocation5 + $0x6c4] ss:$48 sps:$4 sm:$0xff]   ;;  %v6074_v4 = vld [vmem:[#allocation5 + $0x6c0] ss:$48 sps:$4 sm:$0xff]  }
  0x6d   :  { %4229 = vmatpush1.bf16.msra.mxu1 %v6032_v25  ;;  %4415 = vmatprep.subr.bf16.mxu0 %v6093_v40  ;;  %v6129_v3 = vld [vmem:[#allocation5 + $0x4f4] ss:$48 sps:$4 sm:$0xff]   ;;  %v6131_v7 = vld [vmem:[#allocation5 + $0x4f0] ss:$48 sps:$4 sm:$0xff]   ;;  %v6122_v40 = vld [vmem:[#allocation5 + $0xc8] ss:$48 sps:$4 sm:$0xff]  }
  0x6e   :  { %4231 = vmatprep.subr.bf16.mxu1 %v6033_v27  ;;  %v6078_v6 = vld [vmem:[#allocation5 + $0x724] ss:$48 sps:$4 sm:$0xff]   ;;  %v6080_v9 = vld [vmem:[#allocation5 + $0x720] ss:$48 sps:$4 sm:$0xff]   ;;  %v6108_v27 = vld [vmem:[#allocation5 + $0xc] ss:$48 sps:$4 sm:$0xff]  }
  0x6f   :  { %v6135_v8 = vld [vmem:[#allocation5 + $0x554] ss:$48 sps:$4 sm:$0xff]   ;;  %v6137_v11 = vld [vmem:[#allocation5 + $0x550] ss:$48 sps:$4 sm:$0xff]  }
  0x70   :  { %4417 = vmatpush1.bf16.msra.mxu0 %v6095_v43  ;;  %v6084_v10 = vld [vmem:[#allocation5 + $0x784] ss:$48 sps:$4 sm:$0xff]   ;;  %v6086_v13 = vld [vmem:[#allocation5 + $0x780] ss:$48 sps:$4 sm:$0xff]  }
  0x71   :  { %4233 = vmatpush1.bf16.msra.mxu1 %v6035_v29  ;;  %4419 = vmatprep.subr.bf16.mxu0 %v6099_v44  ;;  %v6141_v12 = vld [vmem:[#allocation5 + $0x5b4] ss:$48 sps:$4 sm:$0xff]   ;;  %v6143_v15 = vld [vmem:[#allocation5 + $0x5b0] ss:$48 sps:$4 sm:$0xff]   ;;  %v6128_v44 = vld [vmem:[#allocation5 + $0x128] ss:$48 sps:$4 sm:$0xff]  }
  0x72   :  { %4235 = vmatprep.subr.bf16.mxu1 %v6036_v31  ;;  %v6090_v14 = vld [vmem:[#allocation5 + $0x7e4] ss:$48 sps:$4 sm:$0xff]   ;;  %v6092_v17 = vld [vmem:[#allocation5 + $0x7e0] ss:$48 sps:$4 sm:$0xff]   ;;  %v6110_v31 = vld [vmem:[#allocation5 + $0x8] ss:$48 sps:$4 sm:$0xff]  }
  0x73   :  { %v6147_v16 = vld [vmem:[#allocation5 + $0x614] ss:$48 sps:$4 sm:$0xff]   ;;  %v6149_v20 = vld [vmem:[#allocation5 + $0x610] ss:$48 sps:$4 sm:$0xff]  }
  0x74   :  { %4421 = vmatpush1.bf16.msra.mxu0 %v6101_v46  ;;  %v6096_v18 = vld [vmem:[#allocation5 + $0x844] ss:$48 sps:$4 sm:$0xff]   ;;  %v6098_v22 = vld [vmem:[#allocation5 + $0x840] ss:$48 sps:$4 sm:$0xff]  }
  0x75   :  { %4237 = vmatpush1.bf16.msra.mxu1 %v6038_v33  ;;  %4423 = vmatprep.subr.bf16.mxu0 %v6105_v48  ;;  %v6153_v21 = vld [vmem:[#allocation5 + $0x674] ss:$48 sps:$4 sm:$0xff]   ;;  %v6155_v24 = vld [vmem:[#allocation5 + $0x670] ss:$48 sps:$4 sm:$0xff]   ;;  %v6134_v48 = vld [vmem:[#allocation5 + $0x188] ss:$48 sps:$4 sm:$0xff]  }
  0x76   :  { %4239 = vmatprep.subr.bf16.mxu1 %v6039_v35  ;;  %v6102_v23 = vld [vmem:[#allocation5 + $0x8a4] ss:$48 sps:$4 sm:$0xff]   ;;  %v6104_v26 = vld [vmem:[#allocation5 + $0x8a0] ss:$48 sps:$4 sm:$0xff]   ;;  %v7066_v35 = vld [vmem:[#allocation2 + $0x28] sm:$0xff] }
  0x77   :  { %v6159_v25 = vld [vmem:[#allocation5 + $0x6d4] ss:$48 sps:$4 sm:$0xff]   ;;  %v6161_v28 = vld [vmem:[#allocation5 + $0x6d0] ss:$48 sps:$4 sm:$0xff]  }
  0x78   :  { %4425 = vmatpush1.bf16.msra.mxu0 %v6107_v50  ;;  %v6165_v29 = vld [vmem:[#allocation5 + $0x734] ss:$48 sps:$4 sm:$0xff]   ;;  %v6167_v33 = vld [vmem:[#allocation5 + $0x730] ss:$48 sps:$4 sm:$0xff]  }
  0x79   :  { %4241 = vmatpush1.bf16.msra.mxu1 %v6041_v37  ;;  %4427 = vmatprep.subr.bf16.mxu0 %v6111_v52  ;;  %v6171_v34 = vld [vmem:[#allocation5 + $0x794] ss:$48 sps:$4 sm:$0xff]   ;;  %v6120_v37 = vld [vmem:[#allocation5 + $0xcc] ss:$48 sps:$4 sm:$0xff]   ;;  %v6185_v46 = vld [vmem:[#allocation5 + $0x850] ss:$48 sps:$4 sm:$0xff]  }
  0x7a   :  { %4243 = vmatprep.subr.bf16.mxu1 %v6042_v38  ;;  %v6173_v38 = vld [vmem:[#allocation5 + $0x790] ss:$48 sps:$4 sm:$0xff]   ;;  %v6177_v39 = vld [vmem:[#allocation5 + $0x7f4] ss:$48 sps:$4 sm:$0xff]   ;;  %v6140_v52 = vld [vmem:[#allocation5 + $0x1e8] ss:$48 sps:$4 sm:$0xff]  }
  0x7b   :  { %v6183_v43 = vld [vmem:[#allocation5 + $0x854] ss:$48 sps:$4 sm:$0xff]   ;;  %v6191_v50 = vld [vmem:[#allocation5 + $0x8b0] ss:$48 sps:$4 sm:$0xff]  }
  0x7c   :  { %4429 = vmatpush1.bf16.msra.mxu0 %v6113_v54  ;;  %v6197_v54 = vld [vmem:[#allocation5 + $0x20] ss:$48 sps:$4 sm:$0xff]  }
  0x7d   :  { %4245 = vmatpush1.bf16.msra.mxu1 %v6044_v41  ;;  %4431 = vmatprep.subr.bf16.mxu0 %v6117_v56  ;;  %v6126_v41 = vld [vmem:[#allocation5 + $0x12c] ss:$48 sps:$4 sm:$0xff]   ;;  %v6146_v56 = vld [vmem:[#allocation5 + $0x248] ss:$48 sps:$4 sm:$0xff]  }
  0x7e   :  { %4247 = vmatprep.subr.bf16.mxu1 %v6045_v42  ;;  %v6179_v42 = vld [vmem:[#allocation5 + $0x7f0] ss:$48 sps:$4 sm:$0xff]  }
  0x80   :  { %4433 = vmatpush1.bf16.msra.mxu0 %v6119_v61  ;;  %v6207_v61 = vld [vmem:[#allocation5 + $0xe4] ss:$48 sps:$4 sm:$0xff]  }
  0x81   :  { %4249 = vmatpush1.bf16.msra.mxu1 %v6047_v45  ;;  %4435 = vmatprep.subr.bf16.mxu0 %v6123_v62  ;;  %v6132_v45 = vld [vmem:[#allocation5 + $0x18c] ss:$48 sps:$4 sm:$0xff]   ;;  %v6152_v62 = vld [vmem:[#allocation5 + $0x2a8] ss:$48 sps:$4 sm:$0xff]  }
  0x82   :  { %4251 = vmatprep.subr.bf16.mxu1 %v6048_v47  ;;  %v6189_v47 = vld [vmem:[#allocation5 + $0x8b4] ss:$48 sps:$4 sm:$0xff]  }
  0x84   :  { %4437 = vmatpush1.bf16.msra.mxu0 %v6125_v2  ;;  %v6213_v2 = vld [vmem:[#allocation5 + $0x144] ss:$48 sps:$4 sm:$0xff]  }
  0x85   :  { %4253 = vmatpush1.bf16.msra.mxu1 %v6050_v49  ;;  %4439 = vmatprep.subr.bf16.mxu0 %v6129_v3  ;;  %v6138_v49 = vld [vmem:[#allocation5 + $0x1ec] ss:$48 sps:$4 sm:$0xff]   ;;  %v6158_v3 = vld [vmem:[#allocation5 + $0x308] ss:$48 sps:$4 sm:$0xff]  }
  0x86   :  { %4255 = vmatprep.subr.bf16.mxu1 %v6054_v51  ;;  %v6195_v51 = vld [vmem:[#allocation5 + $0x24] ss:$48 sps:$4 sm:$0xff]  }
  0x88   :  { %4441 = vmatpush1.bf16.msra.mxu0 %v6131_v7  ;;  %v6219_v7 = vld [vmem:[#allocation5 + $0x1a4] ss:$48 sps:$4 sm:$0xff]  }
  0x89   :  { %4257 = vmatpush1.bf16.msra.mxu1 %v6056_v53  ;;  %4443 = vmatprep.subr.bf16.mxu0 %v6135_v8  ;;  %v6144_v53 = vld [vmem:[#allocation5 + $0x24c] ss:$48 sps:$4 sm:$0xff]   ;;  %v6164_v8 = vld [vmem:[#allocation5 + $0x368] ss:$48 sps:$4 sm:$0xff]  }
  0x8a   :  { %4259 = vmatprep.subr.bf16.mxu1 %v6060_v55  ;;  %v6201_v55 = vld [vmem:[#allocation5 + $0x84] ss:$48 sps:$4 sm:$0xff]  }
  0x8c   :  { %2037 = vmatmul.mubr.f32.vlgmr.msra.gmra.mrb[0].mxu1 %v7049_v58  ;;  %4445 = vmatpush1.bf16.msra.mxu0 %v6137_v11  ;;  %v6225_v11 = vld [vmem:[#allocation5 + $0x204] ss:$48 sps:$4 sm:$0xff]  }
  0x8d   :  { %4261 = vmatpush1.bf16.msra.mxu1 %v6062_v57  ;;  %2042 = vmatprep.mubr.f32.mxu1 %v7051_v60  ;;  %v6150_v57 = vld [vmem:[#allocation5 + $0x2ac] ss:$48 sps:$4 sm:$0xff]  }
  0x8e   :  { %4263 = vmatprep.subr.bf16.mxu1 %v6066_v59  ;;  %4447 = vmatprep.subr.bf16.mxu0 %v6141_v12  ;;  %v6203_v59 = vld [vmem:[#allocation5 + $0x80] ss:$48 sps:$4 sm:$0xff]   ;;  %v6170_v12 = vld [vmem:[#allocation5 + $0x3c8] ss:$48 sps:$4 sm:$0xff]  }
  0x90   :  { %2043 = vmatmul.mubr.f32.gmra.mrb[2].mxu1 %v7055_v0  ;;  %4449 = vmatpush1.bf16.msra.mxu0 %v6143_v15  ;;  %v6176_v15 = vld [vmem:[#allocation5 + $0x428] ss:$48 sps:$4 sm:$0xff]  }
  0x91   :  { %4265 = vmatpush1.bf16.msra.mxu1 %v6068_v63  ;;  %2113 = vmatprep.mubr.f32.mxu1 %v6967_v5  ;;  %v6156_v63 = vld [vmem:[#allocation5 + $0x30c] ss:$48 sps:$4 sm:$0xff]  }
  0x92   :  { %4267 = vmatprep.subr.bf16.mxu1 %v6072_v1  ;;  %4451 = vmatprep.subr.bf16.mxu0 %v6147_v16  ;;  %v6209_v1 = vld [vmem:[#allocation5 + $0xe0] ss:$48 sps:$4 sm:$0xff]   ;;  %v6180_v16 = vld [vmem:[#allocation5 + $0x48c] ss:$48 sps:$4 sm:$0xff]  }
  0x93   :  { %2345 = vmatmul.mubr.f32.vlgmr.msra.gmra.mrb[0].mxu0 %v7049_v58 }
  0x94   :  { %4453 = vmatpush1.bf16.msra.mxu0 %v6149_v20  ;;  %2350 = vmatprep.mubr.f32.mxu0 %v7051_v60  ;;  %v6182_v20 = vld [vmem:[#allocation5 + $0x488] ss:$48 sps:$4 sm:$0xff]  }
  0x95   :  { %4269 = vmatpush1.bf16.msra.mxu1 %v6074_v4  ;;  %4455 = vmatprep.subr.bf16.mxu0 %v6153_v21  ;;  %v6162_v4 = vld [vmem:[#allocation5 + $0x36c] ss:$48 sps:$4 sm:$0xff]  }
  0x96   :  { %4271 = vmatprep.subr.bf16.mxu1 %v6078_v6  ;;  %v6215_v6 = vld [vmem:[#allocation5 + $0x140] ss:$48 sps:$4 sm:$0xff]   ;;  %v6186_v21 = vld [vmem:[#allocation5 + $0x4ec] ss:$48 sps:$4 sm:$0xff]  }
  0x97   :  { %2351 = vmatmul.mubr.f32.gmra.mrb[2].mxu0 %v7055_v0 }
  0x98   :  { %4457 = vmatpush1.bf16.msra.mxu0 %v6155_v24  ;;  %2421 = vmatprep.mubr.f32.mxu0 %v6967_v5  ;;  %v6188_v24 = vld [vmem:[#allocation5 + $0x4e8] ss:$48 sps:$4 sm:$0xff]  }
  0x99   :  { %4273 = vmatpush1.bf16.msra.mxu1 %v6080_v9  ;;  %4459 = vmatprep.subr.bf16.mxu0 %v6159_v25  ;;  %v6168_v9 = vld [vmem:[#allocation5 + $0x3cc] ss:$48 sps:$4 sm:$0xff]  }
  0x9a   :  { %4275 = vmatprep.subr.bf16.mxu1 %v6084_v10  ;;  %v6221_v10 = vld [vmem:[#allocation5 + $0x1a0] ss:$48 sps:$4 sm:$0xff]   ;;  %v6192_v25 = vld [vmem:[#allocation5 + $0x54c] ss:$48 sps:$4 sm:$0xff]  }
  0x9c   :  { %4461 = vmatpush1.bf16.msra.mxu0 %v6161_v28  ;;  %v6194_v28 = vld [vmem:[#allocation5 + $0x548] ss:$48 sps:$4 sm:$0xff]  }
  0x9d   :  { %4277 = vmatpush1.bf16.msra.mxu1 %v6086_v13  ;;  %4463 = vmatprep.subr.bf16.mxu0 %v6165_v29  ;;  %v6227_v13 = vld [vmem:[#allocation5 + $0x200] ss:$48 sps:$4 sm:$0xff]   ;;  %v6198_v29 = vld [vmem:[#allocation5 + $0x5ac] ss:$48 sps:$4 sm:$0xff]  }
  0x9e   :  { %4279 = vmatprep.subr.bf16.mxu1 %v6090_v14  ;;  %v6231_v14 = vld [vmem:[#allocation5 + $0x264] ss:$48 sps:$4 sm:$0xff]  }
  0xa0   :  { %4465 = vmatpush1.bf16.msra.mxu0 %v6167_v33  ;;  %v6200_v33 = vld [vmem:[#allocation5 + $0x5a8] ss:$48 sps:$4 sm:$0xff]  }
  0xa1   :  { %4281 = vmatpush1.bf16.msra.mxu1 %v6092_v17  ;;  %4467 = vmatprep.subr.bf16.mxu0 %v6171_v34  ;;  %v6233_v17 = vld [vmem:[#allocation5 + $0x260] ss:$48 sps:$4 sm:$0xff]   ;;  %v6204_v34 = vld [vmem:[#allocation5 + $0x60c] ss:$48 sps:$4 sm:$0xff]  }
  0xa2   :  { %4283 = vmatprep.subr.bf16.mxu1 %v6096_v18  ;;  %v6237_v18 = vld [vmem:[#allocation5 + $0x2c4] ss:$48 sps:$4 sm:$0xff]  }
  0xa4   :  { %4469 = vmatpush1.bf16.msra.mxu0 %v6173_v38  ;;  %v6206_v38 = vld [vmem:[#allocation5 + $0x608] ss:$48 sps:$4 sm:$0xff]  }
  0xa5   :  { %4285 = vmatpush1.bf16.msra.mxu1 %v6098_v22  ;;  %4471 = vmatprep.subr.bf16.mxu0 %v6177_v39  ;;  %v6239_v22 = vld [vmem:[#allocation5 + $0x2c0] ss:$48 sps:$4 sm:$0xff]   ;;  %v6210_v39 = vld [vmem:[#allocation5 + $0x66c] ss:$48 sps:$4 sm:$0xff]  }
  0xa6   :  { %4287 = vmatprep.subr.bf16.mxu1 %v6102_v23  ;;  %v6243_v23 = vld [vmem:[#allocation5 + $0x324] ss:$48 sps:$4 sm:$0xff]  }
  0xa8   :  { %4473 = vmatpush1.bf16.msra.mxu0 %v6179_v42  ;;  %v6212_v42 = vld [vmem:[#allocation5 + $0x668] ss:$48 sps:$4 sm:$0xff]  }
  0xa9   :  { %4289 = vmatpush1.bf16.msra.mxu1 %v6104_v26  ;;  %4475 = vmatprep.subr.bf16.mxu0 %v6183_v43  ;;  %v6245_v26 = vld [vmem:[#allocation5 + $0x320] ss:$48 sps:$4 sm:$0xff]   ;;  %v6216_v43 = vld [vmem:[#allocation5 + $0x6cc] ss:$48 sps:$4 sm:$0xff]  }
  0xaa   :  { %4291 = vmatprep.subr.bf16.mxu1 %v6108_v27  ;;  %v6249_v27 = vld [vmem:[#allocation5 + $0x384] ss:$48 sps:$4 sm:$0xff]  }
  0xac   :  { %2114 = vmatmul.mubr.f32.vlgmr.msra.gmra.mrb[0].mxu1 %v7063_v30  ;;  %4477 = vmatpush1.bf16.msra.mxu0 %v6185_v46  ;;  %v6218_v46 = vld [vmem:[#allocation5 + $0x6c8] ss:$48 sps:$4 sm:$0xff]  }
  0xad   :  { %4293 = vmatpush1.bf16.msra.mxu1 %v6110_v31  ;;  %2119 = vmatprep.mubr.f32.mxu1 %v6967_v5  ;;  %v6251_v31 = vld [vmem:[#allocation5 + $0x380] ss:$48 sps:$4 sm:$0xff]  }
  0xae   :  { %4295 = vmatprep.subr.bf16.mxu1 %v6114_v32  ;;  %4479 = vmatprep.subr.bf16.mxu0 %v6189_v47  ;;  %v6255_v32 = vld [vmem:[#allocation5 + $0x3e4] ss:$48 sps:$4 sm:$0xff]   ;;  %v6222_v47 = vld [vmem:[#allocation5 + $0x72c] ss:$48 sps:$4 sm:$0xff]  }
  0xb0   :  { %2120 = vmatmul.mubr.f32.gmra.mrb[2].mxu1 %v7066_v35  ;;  %4481 = vmatpush1.bf16.msra.mxu0 %v6191_v50  ;;  %v6224_v50 = vld [vmem:[#allocation5 + $0x728] ss:$48 sps:$4 sm:$0xff]  }
  0xb1   :  { %4297 = vmatpush1.bf16.msra.mxu1 %v6116_v36  ;;  %2190 = vmatprep.mubr.f32.mxu1 %v7045_v19  ;;  %v6257_v36 = vld [vmem:[#allocation5 + $0x3e0] ss:$48 sps:$4 sm:$0xff]  }
  0xb2   :  { %4299 = vmatprep.subr.bf16.mxu1 %v6120_v37  ;;  %4579 = vmatprep.subr.bf16.mxu0 %v6195_v51  ;;  %v6261_v37 = vld [vmem:[#allocation5 + $0x444] ss:$48 sps:$4 sm:$0xff]   ;;  %v6228_v51 = vld [vmem:[#allocation5 + $0x78c] ss:$48 sps:$4 sm:$0xff]  }
  0xb3   :  { %2422 = vmatmul.mubr.f32.vlgmr.msra.gmra.mrb[0].mxu0 %v7063_v30 }
  0xb4   :  { %4581 = vmatpush1.bf16.msra.mxu0 %v6197_v54  ;;  %2427 = vmatprep.mubr.f32.mxu0 %v6967_v5  ;;  %v6230_v54 = vld [vmem:[#allocation5 + $0x788] ss:$48 sps:$4 sm:$0xff]  }
  0xb5   :  { %4301 = vmatpush1.bf16.msra.mxu1 %v6122_v40  ;;  %4583 = vmatprep.subr.bf16.mxu0 %v6201_v55  ;;  %v6263_v40 = vld [vmem:[#allocation5 + $0x440] ss:$48 sps:$4 sm:$0xff]   ;;  %v6234_v55 = vld [vmem:[#allocation5 + $0x7ec] ss:$48 sps:$4 sm:$0xff]  }
  0xb6   :  { %4303 = vmatprep.subr.bf16.mxu1 %v6126_v41  ;;  %v6267_v41 = vld [vmem:[#allocation5 + $0x4a4] ss:$48 sps:$4 sm:$0xff]  }
  0xb7   :  { %2428 = vmatmul.mubr.f32.gmra.mrb[2].mxu0 %v7066_v35 }
  0xb8   :  { %4585 = vmatpush1.bf16.msra.mxu0 %v6203_v59  ;;  %2652 = vmatprep.mubr.f32.mxu0 %v7045_v19  ;;  %v6174_v19 = vld [vmem:[#allocation5 + $0x42c] ss:$48 sps:$4 sm:$0xff]   ;;  %v6236_v59 = vld [vmem:[#allocation5 + $0x7e8] ss:$48 sps:$4 sm:$0xff]  }
  0xb9   :  { %4305 = vmatpush1.bf16.msra.mxu1 %v6128_v44  ;;  %4587 = vmatprep.subr.bf16.mxu0 %v6207_v61  ;;  %v6269_v44 = vld [vmem:[#allocation5 + $0x4a0] ss:$48 sps:$4 sm:$0xff]   ;;  %v6240_v61 = vld [vmem:[#allocation5 + $0x84c] ss:$48 sps:$4 sm:$0xff]  }
  0xba   :  { %4307 = vmatprep.subr.bf16.mxu1 %v6132_v45  ;;  %v6273_v45 = vld [vmem:[#allocation5 + $0x504] ss:$48 sps:$4 sm:$0xff]  }
  0xbc   :  { %4589 = vmatpush1.bf16.msra.mxu0 %v6209_v1  ;;  %v6242_v1 = vld [vmem:[#allocation5 + $0x848] ss:$48 sps:$4 sm:$0xff]  }
  0xbd   :  { %4309 = vmatpush1.bf16.msra.mxu1 %v6134_v48  ;;  %4591 = vmatprep.subr.bf16.mxu0 %v6213_v2  ;;  %v6275_v48 = vld [vmem:[#allocation5 + $0x500] ss:$48 sps:$4 sm:$0xff]   ;;  %v6246_v2 = vld [vmem:[#allocation5 + $0x8ac] ss:$48 sps:$4 sm:$0xff]  }
  0xbe   :  { %4311 = vmatprep.subr.bf16.mxu1 %v6138_v49  ;;  %v6279_v49 = vld [vmem:[#allocation5 + $0x564] ss:$48 sps:$4 sm:$0xff]  }
  0xc0   :  { %4593 = vmatpush1.bf16.msra.mxu0 %v6215_v6  ;;  %v6248_v6 = vld [vmem:[#allocation5 + $0x8a8] ss:$48 sps:$4 sm:$0xff]  }
  0xc1   :  { %4313 = vmatpush1.bf16.msra.mxu1 %v6140_v52  ;;  %4595 = vmatprep.subr.bf16.mxu0 %v6219_v7  ;;  %v6281_v52 = vld [vmem:[#allocation5 + $0x560] ss:$48 sps:$4 sm:$0xff]   ;;  %v6252_v7 = vld [vmem:[#allocation5 + $0x1c] ss:$48 sps:$4 sm:$0xff]  }
  0xc2   :  { %4315 = vmatprep.subr.bf16.mxu1 %v6144_v53  ;;  %v6285_v53 = vld [vmem:[#allocation5 + $0x5c4] ss:$48 sps:$4 sm:$0xff]  }
  0xc4   :  { %4597 = vmatpush1.bf16.msra.mxu0 %v6221_v10  ;;  %v6258_v10 = vld [vmem:[#allocation5 + $0x7c] ss:$48 sps:$4 sm:$0xff]  }
  0xc5   :  { %4317 = vmatpush1.bf16.msra.mxu1 %v6146_v56  ;;  %4599 = vmatprep.subr.bf16.mxu0 %v6225_v11  ;;  %v6287_v56 = vld [vmem:[#allocation5 + $0x5c0] ss:$48 sps:$4 sm:$0xff]  }
  0xc6   :  { %4319 = vmatprep.subr.bf16.mxu1 %v6150_v57  ;;  %v6291_v57 = vld [vmem:[#allocation5 + $0x624] ss:$48 sps:$4 sm:$0xff]   ;;  %v6311_v11 = vld [vmem:[#allocation5 + $0x740] ss:$48 sps:$4 sm:$0xff]  }
  0xc8   :  { %4601 = vmatpush1.bf16.msra.mxu0 %v6227_v13  ;;  %v6321_v13 = vld [vmem:[#allocation5 + $0x804] ss:$48 sps:$4 sm:$0xff]  }
  0xc9   :  { %4321 = vmatpush1.bf16.msra.mxu1 %v6152_v62  ;;  %4603 = vmatprep.subr.bf16.mxu0 %v6231_v14  ;;  %v6293_v62 = vld [vmem:[#allocation5 + $0x620] ss:$48 sps:$4 sm:$0xff]   ;;  %v6266_v14 = vld [vmem:[#allocation5 + $0xd8] ss:$48 sps:$4 sm:$0xff]  }
  0xca   :  { %4323 = vmatprep.subr.bf16.mxu1 %v6156_v63  ;;  %v6297_v63 = vld [vmem:[#allocation5 + $0x684] ss:$48 sps:$4 sm:$0xff]  }
  0xcc   :  { %4605 = vmatpush1.bf16.msra.mxu0 %v6233_v17  ;;  %v7086_v17 = vld [vmem:[#allocation2 + $0x8] sm:$0xff] }
  0xcd   :  { %4325 = vmatpush1.bf16.msra.mxu1 %v6158_v3  ;;  %4607 = vmatprep.subr.bf16.mxu0 %v6237_v18  ;;  %v6299_v3 = vld [vmem:[#allocation5 + $0x680] ss:$48 sps:$4 sm:$0xff]   ;;  %v6327_v18 = vld [vmem:[#allocation5 + $0x864] ss:$48 sps:$4 sm:$0xff]  }
  0xce   :  { %4327 = vmatprep.subr.bf16.mxu1 %v6162_v4  ;;  %v6303_v4 = vld [vmem:[#allocation5 + $0x6e4] ss:$48 sps:$4 sm:$0xff]  }
  0xd0   :  { %4609 = vmatpush1.bf16.msra.mxu0 %v6239_v22  ;;  %v6329_v22 = vld [vmem:[#allocation5 + $0x860] ss:$48 sps:$4 sm:$0xff]  }
  0xd1   :  { %4329 = vmatpush1.bf16.msra.mxu1 %v6164_v8  ;;  %4611 = vmatprep.subr.bf16.mxu0 %v6243_v23  ;;  %v6305_v8 = vld [vmem:[#allocation5 + $0x6e0] ss:$48 sps:$4 sm:$0xff]   ;;  %v6333_v23 = vld [vmem:[#allocation5 + $0x8c4] ss:$48 sps:$4 sm:$0xff]  }
  0xd2   :  { %4331 = vmatprep.subr.bf16.mxu1 %v6168_v9  ;;  %v6309_v9 = vld [vmem:[#allocation5 + $0x744] ss:$48 sps:$4 sm:$0xff]  }
  0xd4   :  { %4613 = vmatpush1.bf16.msra.mxu0 %v6245_v26  ;;  %v6335_v26 = vld [vmem:[#allocation5 + $0x8c0] ss:$48 sps:$4 sm:$0xff]  }
  0xd5   :  { %4333 = vmatpush1.bf16.msra.mxu1 %v6170_v12  ;;  %4615 = vmatprep.subr.bf16.mxu0 %v6249_v27  ;;  %v6264_v12 = vld [vmem:[#allocation5 + $0xdc] ss:$48 sps:$4 sm:$0xff]   ;;  %v6339_v27 = vld [vmem:[#allocation7 + $0x4] ss:$12 sps:$4 sm:$0xff]  }
  0xd6   :  { %4335 = vmatprep.subr.bf16.mxu1 %v6174_v19  ;;  %v6317_v19 = vld [vmem:[#allocation5 + $0x7a0] ss:$48 sps:$4 sm:$0xff]  }
  0xd8   :  { %4617 = vmatpush1.bf16.msra.mxu0 %v6251_v31  ;;  %v6341_v31 = vld [vmem:[#allocation7] ss:$12 sps:$4 sm:$0xff]  }
  0xd9   :  { %4337 = vmatpush1.bf16.msra.mxu1 %v6176_v15  ;;  %4619 = vmatprep.subr.bf16.mxu0 %v6255_v32  ;;  %v6270_v15 = vld [vmem:[#allocation5 + $0x13c] ss:$48 sps:$4 sm:$0xff]  }
  0xda   :  { %4339 = vmatprep.subr.bf16.mxu1 %v6180_v16  ;;  %v6323_v16 = vld [vmem:[#allocation5 + $0x800] ss:$48 sps:$4 sm:$0xff]   ;;  %v6345_v32 = vld [vmem:[#allocation7 + $0x1c] ss:$12 sps:$4 sm:$0xff]  }
  0xdc   :  { %4621 = vmatpush1.bf16.msra.mxu0 %v6257_v36  ;;  %v6347_v36 = vld [vmem:[#allocation7 + $0x18] ss:$12 sps:$4 sm:$0xff]  }
  0xdd   :  { %4341 = vmatpush1.bf16.msra.mxu1 %v6182_v20  ;;  %4623 = vmatprep.subr.bf16.mxu0 %v6261_v37  ;;  %v6272_v20 = vld [vmem:[#allocation5 + $0x138] ss:$48 sps:$4 sm:$0xff]   ;;  %v6351_v37 = vld [vmem:[#allocation7 + $0x34] ss:$12 sps:$4 sm:$0xff]  }
  0xde   :  { %4343 = vmatprep.subr.bf16.mxu1 %v6186_v21  ;;  %v6276_v21 = vld [vmem:[#allocation5 + $0x19c] ss:$48 sps:$4 sm:$0xff]  }
  0xe0   :  { %4625 = vmatpush1.bf16.msra.mxu0 %v6263_v40  ;;  %v6353_v40 = vld [vmem:[#allocation7 + $0x30] ss:$12 sps:$4 sm:$0xff]  }
  0xe1   :  { %4345 = vmatpush1.bf16.msra.mxu1 %v6188_v24  ;;  %4627 = vmatprep.subr.bf16.mxu0 %v6267_v41  ;;  %v6278_v24 = vld [vmem:[#allocation5 + $0x198] ss:$48 sps:$4 sm:$0xff]  }
  0xe2   :  { %4347 = vmatprep.subr.bf16.mxu1 %v6192_v25  ;;  %v6282_v25 = vld [vmem:[#allocation5 + $0x1fc] ss:$48 sps:$4 sm:$0xff]  }
  0xe3   :  { %v6357_v41 = vld [vmem:[#allocation7 + $0x4c] ss:$12 sps:$4 sm:$0xff]  }
  0xe4   :  { %4629 = vmatpush1.bf16.msra.mxu0 %v6269_v44  ;;  %v6363_v44 = vld [vmem:[#allocation7 + $0x64] ss:$12 sps:$4 sm:$0xff]  }
  0xe5   :  { %4349 = vmatpush1.bf16.msra.mxu1 %v6194_v28  ;;  %4631 = vmatprep.subr.bf16.mxu0 %v6273_v45  ;;  %v6284_v28 = vld [vmem:[#allocation5 + $0x1f8] ss:$48 sps:$4 sm:$0xff]  }
  0xe6   :  { %4351 = vmatprep.subr.bf16.mxu1 %v6198_v29  ;;  %v6288_v29 = vld [vmem:[#allocation5 + $0x25c] ss:$48 sps:$4 sm:$0xff]   ;;  %v6308_v45 = vld [vmem:[#allocation5 + $0x378] ss:$48 sps:$4 sm:$0xff]  }
  0xe8   :  { %4633 = vmatpush1.bf16.msra.mxu0 %v6275_v48  ;;  %v6314_v48 = vld [vmem:[#allocation5 + $0x3d8] ss:$48 sps:$4 sm:$0xff]  }
  0xe9   :  { %4353 = vmatpush1.bf16.msra.mxu1 %v6200_v33  ;;  %4635 = vmatprep.subr.bf16.mxu0 %v6279_v49  ;;  %v6290_v33 = vld [vmem:[#allocation5 + $0x258] ss:$48 sps:$4 sm:$0xff]   ;;  %v6318_v49 = vld [vmem:[#allocation5 + $0x43c] ss:$48 sps:$4 sm:$0xff]  }
  0xea   :  { %4355 = vmatprep.subr.bf16.mxu1 %v6204_v34  ;;  %v6294_v34 = vld [vmem:[#allocation5 + $0x2bc] ss:$48 sps:$4 sm:$0xff]  }
  0xec   :  { %2191 = vmatmul.mubr.f32.vlgmr.msra.gmra.mrb[4].mxu1 %v7049_v58  ;;  %4637 = vmatpush1.bf16.msra.mxu0 %v6281_v52  ;;  %v6320_v52 = vld [vmem:[#allocation5 + $0x438] ss:$48 sps:$4 sm:$0xff]  }
  0xed   :  { %4357 = vmatpush1.bf16.msra.mxu1 %v6206_v38  ;;  %2196 = vmatprep.mubr.f32.mxu1 %v7051_v60  ;;  %v6296_v38 = vld [vmem:[#allocation5 + $0x2b8] ss:$48 sps:$4 sm:$0xff]  }
  0xee   :  { %4359 = vmatprep.subr.bf16.mxu1 %v6210_v39  ;;  %4639 = vmatprep.subr.bf16.mxu0 %v6285_v53  ;;  %v6300_v39 = vld [vmem:[#allocation5 + $0x31c] ss:$48 sps:$4 sm:$0xff]  }
  0xef   :  { %v6324_v53 = vld [vmem:[#allocation5 + $0x49c] ss:$48 sps:$4 sm:$0xff]  }
  0xf0   :  { %2197 = vmatmul.mubr.f32.gmra.mrb[6].mxu1 %v7055_v0  ;;  %4641 = vmatpush1.bf16.msra.mxu0 %v6287_v56  ;;  %v6326_v56 = vld [vmem:[#allocation5 + $0x498] ss:$48 sps:$4 sm:$0xff]  }
  0xf1   :  { %4361 = vmatpush1.bf16.msra.mxu1 %v6212_v42  ;;  %2267 = vmatprep.mubr.f32.mxu1 %v6967_v5  ;;  %v6302_v42 = vld [vmem:[#allocation5 + $0x318] ss:$48 sps:$4 sm:$0xff]  }
  0xf2   :  { %4363 = vmatprep.subr.bf16.mxu1 %v6216_v43  ;;  %4643 = vmatprep.subr.bf16.mxu0 %v6291_v57  ;;  %v6359_v43 = vld [vmem:[#allocation7 + $0x48] ss:$12 sps:$4 sm:$0xff]   ;;  %v6330_v57 = vld [vmem:[#allocation5 + $0x4fc] ss:$48 sps:$4 sm:$0xff]  }
  0xf3   :  { %2653 = vmatmul.mubr.f32.vlgmr.msra.gmra.mrb[4].mxu0 %v7049_v58  ;;  %v6254_v58 = vld [vmem:[#allocation5 + $0x18] ss:$48 sps:$4 sm:$0xff]  }
  0xf4   :  { %4645 = vmatpush1.bf16.msra.mxu0 %v6293_v62  ;;  %2658 = vmatprep.mubr.f32.mxu0 %v7051_v60  ;;  %v6315_v60 = vld [vmem:[#allocation5 + $0x7a4] ss:$48 sps:$4 sm:$0xff]   ;;  %v6332_v62 = vld [vmem:[#allocation5 + $0x4f8] ss:$48 sps:$4 sm:$0xff]  }
  0xf5   :  { %4365 = vmatpush1.bf16.msra.mxu1 %v6218_v46  ;;  %4647 = vmatprep.subr.bf16.mxu0 %v6297_v63  ;;  %v6312_v46 = vld [vmem:[#allocation5 + $0x3dc] ss:$48 sps:$4 sm:$0xff]  }
  0xf6   :  { %4367 = vmatprep.subr.bf16.mxu1 %v6222_v47  ;;  %v6365_v47 = vld [vmem:[#allocation7 + $0x60] ss:$12 sps:$4 sm:$0xff]  }
  0xf7   :  { %2659 = vmatmul.mubr.f32.gmra.mrb[6].mxu0 %v7055_v0  ;;  %v6260_v0 = vld [vmem:[#allocation5 + $0x78] ss:$48 sps:$4 sm:$0xff]   ;;  %v6336_v63 = vld [vmem:[#allocation5 + $0x55c] ss:$48 sps:$4 sm:$0xff]  }
  0xf8   :  { %4649 = vmatpush1.bf16.msra.mxu0 %v6299_v3  ;;  %2729 = vmatprep.mubr.f32.mxu0 %v6967_v5  ;;  %v6338_v3 = vld [vmem:[#allocation5 + $0x558] ss:$48 sps:$4 sm:$0xff]  }
  0xf9   :  { %4369 = vmatpush1.bf16.msra.mxu1 %v6224_v50  ;;  %4651 = vmatprep.subr.bf16.mxu0 %v6303_v4  ;;  %v6371_v50 = vld [vmem:[#allocation7 + $0x78] ss:$12 sps:$4 sm:$0xff]   ;;  %v6342_v4 = vld [vmem:[#allocation5 + $0x5bc] ss:$48 sps:$4 sm:$0xff]  }
  0xfa   :  { %4371 = vmatprep.subr.bf16.mxu1 %v6228_v51  ;;  %v6375_v51 = vld [vmem:[#allocation7 + $0x94] ss:$12 sps:$4 sm:$0xff]  }
  0xfc   :  { %4653 = vmatpush1.bf16.msra.mxu0 %v6305_v8  ;;  %v6344_v8 = vld [vmem:[#allocation5 + $0x5b8] ss:$48 sps:$4 sm:$0xff]  }
  0xfd   :  { %4373 = vmatpush1.bf16.msra.mxu1 %v6230_v54  ;;  %4655 = vmatprep.subr.bf16.mxu0 %v6309_v9  ;;  %v6377_v54 = vld [vmem:[#allocation7 + $0x90] ss:$12 sps:$4 sm:$0xff]  }
  0xfe   :  { %4375 = vmatprep.subr.bf16.mxu1 %v6234_v55  ;;  %v6381_v55 = vld [vmem:[#allocation7 + $0xac] ss:$12 sps:$4 sm:$0xff]  }
  0xff   :  { %v6348_v9 = vld [vmem:[#allocation5 + $0x61c] ss:$48 sps:$4 sm:$0xff]  }
 0x100   :  { %4657 = vmatpush1.bf16.msra.mxu0 %v6311_v11  ;;  %v6405_v11 = vld [vmem:[#allocation7 + $0x10c] ss:$12 sps:$4 sm:$0xff]  }
 0x101   :  { %4377 = vmatpush1.bf16.msra.mxu1 %v6236_v59  ;;  %4659 = vmatprep.subr.bf16.mxu0 %v6315_v60  ;;  %v6383_v59 = vld [vmem:[#allocation7 + $0xa8] ss:$12 sps:$4 sm:$0xff]   ;;  %v6354_v60 = vld [vmem:[#allocation5 + $0x67c] ss:$48 sps:$4 sm:$0xff]  }
 0x102   :  { %4379 = vmatprep.subr.bf16.mxu1 %v6240_v61  ;;  %v6387_v61 = vld [vmem:[#allocation7 + $0xc4] ss:$12 sps:$4 sm:$0xff]  }
 0x104   :  { %4661 = vmatpush1.bf16.msra.mxu0 %v6317_v19  ;;  %v6411_v19 = vld [vmem:[#allocation7 + $0x124] ss:$12 sps:$4 sm:$0xff]  }
 0x105   :  { %4381 = vmatpush1.bf16.msra.mxu1 %v6242_v1  ;;  %4663 = vmatprep.subr.bf16.mxu0 %v6321_v13  ;;  %v6389_v1 = vld [vmem:[#allocation7 + $0xc0] ss:$12 sps:$4 sm:$0xff]   ;;  %v7092_v13 = vld [vmem:[#allocation2] sm:$0xff] }
 0x106   :  { %4383 = vmatprep.subr.bf16.mxu1 %v6246_v2  ;;  %v6393_v2 = vld [vmem:[#allocation7 + $0xdc] ss:$12 sps:$4 sm:$0xff]  }
 0x108   :  { %4665 = vmatpush1.bf16.msra.mxu0 %v6323_v16  ;;  %v6413_v16 = vld [vmem:[#allocation7 + $0x120] ss:$12 sps:$4 sm:$0xff]  }
 0x109   :  { %4385 = vmatpush1.bf16.msra.mxu1 %v6248_v6  ;;  %4667 = vmatprep.subr.bf16.mxu0 %v6327_v18  ;;  %v6395_v6 = vld [vmem:[#allocation7 + $0xd8] ss:$12 sps:$4 sm:$0xff]   ;;  %v6417_v18 = vld [vmem:[#allocation7 + $0x13c] ss:$12 sps:$4 sm:$0xff]  }
 0x10a   :  { %4483 = vmatprep.subr.bf16.mxu1 %v6252_v7  ;;  %v6399_v7 = vld [vmem:[#allocation7 + $0xf4] ss:$12 sps:$4 sm:$0xff]  }
 0x10c   :  { %2268 = vmatmul.mubr.f32.vlgmr.msra.gmra.mrb[4].mxu1 %v7063_v30  ;;  %4669 = vmatpush1.bf16.msra.mxu0 %v6329_v22  ;;  %v6366_v22 = vld [vmem:[#allocation5 + $0x73c] ss:$48 sps:$4 sm:$0xff]  }
 0x10d   :  { %4485 = vmatpush1.bf16.msra.mxu1 %v6254_v58  ;;  %2273 = vmatprep.mubr.f32.mxu1 %v6967_v5  ;;  %v6401_v58 = vld [vmem:[#allocation7 + $0xf0] ss:$12 sps:$4 sm:$0xff]  }
 0x10e   :  { %4487 = vmatprep.subr.bf16.mxu1 %v6258_v10  ;;  %4671 = vmatprep.subr.bf16.mxu0 %v6333_v23  ;;  %v6350_v10 = vld [vmem:[#allocation5 + $0x618] ss:$48 sps:$4 sm:$0xff]  }
 0x10f   :  { %v6419_v23 = vld [vmem:[#allocation7 + $0x138] ss:$12 sps:$4 sm:$0xff]  }
 0x110   :  { %2274 = vmatmul.mubr.f32.gmra.mrb[6].mxu1 %v7066_v35  ;;  %4673 = vmatpush1.bf16.msra.mxu0 %v6335_v26  ;;  %v6372_v26 = vld [vmem:[#allocation5 + $0x79c] ss:$48 sps:$4 sm:$0xff]  }
 0x111   :  { %4489 = vmatpush1.bf16.msra.mxu1 %v6260_v0  ;;  %2498 = vmatprep.mubr.f32.mxu1 %v7086_v17  ;;  %v6407_v0 = vld [vmem:[#allocation7 + $0x108] ss:$12 sps:$4 sm:$0xff]  }
 0x112   :  { %4491 = vmatprep.subr.bf16.mxu1 %v6264_v12  ;;  %4771 = vmatprep.subr.bf16.mxu0 %v6339_v27  ;;  %v6356_v12 = vld [vmem:[#allocation5 + $0x678] ss:$48 sps:$4 sm:$0xff]   ;;  %v6425_v27 = vld [vmem:[#allocation7 + $0x150] ss:$12 sps:$4 sm:$0xff]  }
 0x113   :  { %2730 = vmatmul.mubr.f32.vlgmr.msra.gmra.mrb[4].mxu0 %v7063_v30  ;;  %v6306_v30 = vld [vmem:[#allocation5 + $0x37c] ss:$48 sps:$4 sm:$0xff]  }
 0x114   :  { %4773 = vmatpush1.bf16.msra.mxu0 %v6341_v31  ;;  %2735 = vmatprep.mubr.f32.mxu0 %v6967_v5  ;;  %v6378_v31 = vld [vmem:[#allocation5 + $0x7fc] ss:$48 sps:$4 sm:$0xff]  }
 0x115   :  { %4493 = vmatpush1.bf16.msra.mxu1 %v6266_v14  ;;  %4775 = vmatprep.subr.bf16.mxu0 %v6345_v32  ;;  %v6360_v14 = vld [vmem:[#allocation5 + $0x6dc] ss:$48 sps:$4 sm:$0xff]   ;;  %v6431_v32 = vld [vmem:[#allocation7 + $0x168] ss:$12 sps:$4 sm:$0xff]  }
 0x116   :  { %4495 = vmatprep.subr.bf16.mxu1 %v6270_v15  ;;  %v7095_v15 = vld [vmem:[#allocation2 + $0x20] sm:$0xff] }
 0x117   :  { %2736 = vmatmul.mubr.f32.gmra.mrb[6].mxu0 %v7066_v35  ;;  %v6369_v35 = vld [vmem:[#allocation7 + $0x7c] ss:$12 sps:$4 sm:$0xff]  }
 0x118   :  { %4777 = vmatpush1.bf16.msra.mxu0 %v6347_v36  ;;  %v6384_v36 = vld [vmem:[#allocation5 + $0x85c] ss:$48 sps:$4 sm:$0xff]  }
 0x119   :  { %4497 = vmatpush1.bf16.msra.mxu1 %v6272_v20  ;;  %4779 = vmatprep.subr.bf16.mxu0 %v6351_v37  ;;  %v7098_v20 = vld [vmem:[#allocation2 + $0x18] sm:$0xff] }
 0x11a   :  { %4499 = vmatprep.subr.bf16.mxu1 %v6276_v21  ;;  %v6362_v21 = vld [vmem:[#allocation5 + $0x6d8] ss:$48 sps:$4 sm:$0xff]  }
 0x11b   :  { %v6386_v37 = vld [vmem:[#allocation5 + $0x858] ss:$48 sps:$4 sm:$0xff]  }
 0x11c   :  { %4781 = vmatpush1.bf16.msra.mxu0 %v6353_v40  ;;  %v6396_v40 = vld [vmem:[#allocation5 + $0x2c] ss:$48 sps:$4 sm:$0xff]  }
 0x11d   :  { %4501 = vmatpush1.bf16.msra.mxu1 %v6278_v24  ;;  %4783 = vmatprep.subr.bf16.mxu0 %v6357_v41  ;;  %v6423_v24 = vld [vmem:[#allocation7 + $0x154] ss:$12 sps:$4 sm:$0xff]   ;;  %v6398_v41 = vld [vmem:[#allocation5 + $0x28] ss:$48 sps:$4 sm:$0xff]  }
 0x11e   :  { %4503 = vmatprep.subr.bf16.mxu1 %v6282_v25  ;;  %v6368_v25 = vld [vmem:[#allocation5 + $0x738] ss:$48 sps:$4 sm:$0xff]  }
 0x120   :  { %4785 = vmatpush1.bf16.msra.mxu0 %v6359_v43  ;;  %v6404_v43 = vld [vmem:[#allocation5 + $0x88] ss:$48 sps:$4 sm:$0xff]  }
 0x121   :  { %4505 = vmatpush1.bf16.msra.mxu1 %v6284_v28  ;;  %4787 = vmatprep.subr.bf16.mxu0 %v6363_v44  ;;  %v6429_v28 = vld [vmem:[#allocation7 + $0x16c] ss:$12 sps:$4 sm:$0xff]  }
 0x122   :  { %4507 = vmatprep.subr.bf16.mxu1 %v6288_v29  ;;  %v6374_v29 = vld [vmem:[#allocation5 + $0x798] ss:$48 sps:$4 sm:$0xff]   ;;  %v6408_v44 = vld [vmem:[#allocation5 + $0xec] ss:$48 sps:$4 sm:$0xff]  }
 0x124   :  { %4789 = vmatpush1.bf16.msra.mxu0 %v6365_v47  ;;  %v7106_v47 = vld [vmem:[#allocation2 + $0x28] sm:$0xff] }
 0x125   :  { %4509 = vmatpush1.bf16.msra.mxu1 %v6290_v33  ;;  %4791 = vmatprep.subr.bf16.mxu0 %v6369_v35  ;;  %v6459_v33 = vld [vmem:[#allocation7 + $0x184] ss:$12 sps:$4 sm:$0xff]   ;;  %v6414_v35 = vld [vmem:[#allocation5 + $0x14c] ss:$48 sps:$4 sm:$0xff]  }
 0x126   :  { %4511 = vmatprep.subr.bf16.mxu1 %v6294_v34  ;;  %v6380_v34 = vld [vmem:[#allocation5 + $0x7f8] ss:$48 sps:$4 sm:$0xff]  }
 0x128   :  { %4793 = vmatpush1.bf16.msra.mxu0 %v6371_v50  ;;  %v6420_v50 = vld [vmem:[#allocation5 + $0x1ac] ss:$48 sps:$4 sm:$0xff]  }
 0x129   :  { %4513 = vmatpush1.bf16.msra.mxu1 %v6296_v38  ;;  %4795 = vmatprep.subr.bf16.mxu0 %v6375_v51  ;;  %v6390_v38 = vld [vmem:[#allocation5 + $0x8bc] ss:$48 sps:$4 sm:$0xff]   ;;  %v6422_v51 = vld [vmem:[#allocation5 + $0x1a8] ss:$48 sps:$4 sm:$0xff]  }
 0x12a   :  { %4515 = vmatprep.subr.bf16.mxu1 %v6300_v39  ;;  %v6392_v39 = vld [vmem:[#allocation5 + $0x8b8] ss:$48 sps:$4 sm:$0xff]  }
 0x12c   :  { %4797 = vmatpush1.bf16.msra.mxu0 %v6377_v54  ;;  %v6426_v54 = vld [vmem:[#allocation5 + $0x20c] ss:$48 sps:$4 sm:$0xff]  }
 0x12d   :  { %4517 = vmatpush1.bf16.msra.mxu1 %v6302_v42  ;;  %4799 = vmatprep.subr.bf16.mxu0 %v6381_v55  ;;  %v6402_v42 = vld [vmem:[#allocation5 + $0x8c] ss:$48 sps:$4 sm:$0xff]  }
 0x12e   :  { %4519 = vmatprep.subr.bf16.mxu1 %v6306_v30  ;;  %v7102_v30 = vld [vmem:[#allocation2 + $0x10] sm:$0xff] }
 0x130   :  { %4801 = vmatpush1.bf16.msra.mxu0 %v6383_v59 }
 0x131   :  { %4521 = vmatpush1.bf16.msra.mxu1 %v6308_v45  ;;  %4803 = vmatprep.subr.bf16.mxu0 %v6387_v61  ;;  %v1912_v45 = vlaneseq }
 0x132   :  { %4523 = vmatprep.subr.bf16.mxu1 %v6312_v46  ;;  %v6410_v46 = vld [vmem:[#allocation5 + $0xe8] ss:$48 sps:$4 sm:$0xff]  }
 0x134   :  { %4805 = vmatpush1.bf16.msra.mxu0 %v6389_v1  ;;  %v6434_v1 = vld [vmem:[#allocation5 + $0x268] ss:$48 sps:$4 sm:$0xff]  }
 0x135   :  { %4525 = vmatpush1.bf16.msra.mxu1 %v6314_v48  ;;  %4807 = vmatprep.subr.bf16.mxu0 %v6393_v2  ;;  %v7110_v48 = vshrl.u32 %v1912_v45, 7  ;;  %v6435_v2 = vld [vmem:[#allocation5 + $0x2cc] ss:$48 sps:$4 sm:$0xff]  }
 0x136   :  { %4527 = vmatprep.subr.bf16.mxu1 %v6318_v49  ;;  %v6416_v49 = vld [vmem:[#allocation5 + $0x148] ss:$48 sps:$4 sm:$0xff]   ;;  %v6497_v45 = vld [vmem:[#allocation7 + $0x210] ss:$12 sps:$4 sm:$0xff]  }
 0x137   :  { %v7118_v55 = vsub.s32 1, %v7110_v48 }
 0x138   :  { %4809 = vmatpush1.bf16.msra.mxu0 %v6395_v6 }
 0x139   :  { %4529 = vmatpush1.bf16.msra.mxu1 %v6320_v52  ;;  %4811 = vmatprep.subr.bf16.mxu0 %v6399_v7  ;;  %v7113_v52 = vsub.s32 0, %v7110_v48  ;;  %v6437_v7 = vld [vmem:[#allocation5 + $0x2c8] ss:$48 sps:$4 sm:$0xff]  }
 0x13a   :  { %4531 = vmatprep.subr.bf16.mxu1 %v6324_v53  ;;  %v7115_v53 = vld [vmem:[#allocation8] ss:$4 sm:$0xff] }
 0x13b   :  { %v1919_v59 = vrot.slane %v7115_v53, %v7118_v55 }
 0x13c   :  { %4813 = vmatpush1.bf16.msra.mxu0 %v6401_v58 }
 0x13d   :  { %4533 = vmatpush1.bf16.msra.mxu1 %v6326_v56  ;;  %4815 = vmatprep.subr.bf16.mxu0 %v6405_v11  ;;  %v6428_v56 = vld [vmem:[#allocation5 + $0x208] ss:$48 sps:$4 sm:$0xff]   ;;  %v6438_v11 = vld [vmem:[#allocation5 + $0x32c] ss:$48 sps:$4 sm:$0xff]  }
 0x13e   :  { %4535 = vmatprep.subr.bf16.mxu1 %v6330_v57  ;;  %v6432_v57 = vld [vmem:[#allocation5 + $0x26c] ss:$48 sps:$4 sm:$0xff]  }
 0x140   :  { %4817 = vmatpush1.bf16.msra.mxu0 %v6407_v0 }
 0x141   :  { %4537 = vmatpush1.bf16.msra.mxu1 %v6332_v62  ;;  %4819 = vmatprep.subr.bf16.mxu0 %v6411_v19  ;;  %v6440_v19 = vld [vmem:[#allocation5 + $0x328] ss:$48 sps:$4 sm:$0xff]  }
 0x142   :  { %4539 = vmatprep.subr.bf16.mxu1 %v6336_v63 }
 0x144   :  { %4821 = vmatpush1.bf16.msra.mxu0 %v6413_v16 }
 0x145   :  { %4541 = vmatpush1.bf16.msra.mxu1 %v6338_v3  ;;  %4823 = vmatprep.subr.bf16.mxu0 %v6417_v18  ;;  %v6441_v18 = vld [vmem:[#allocation5 + $0x38c] ss:$48 sps:$4 sm:$0xff]  }
 0x146   :  { %4543 = vmatprep.subr.bf16.mxu1 %v6342_v4 }
 0x148   :  { %4825 = vmatpush1.bf16.msra.mxu0 %v6419_v23  ;;  %v6443_v23 = vld [vmem:[#allocation5 + $0x388] ss:$48 sps:$4 sm:$0xff]  }
 0x149   :  { %4545 = vmatpush1.bf16.msra.mxu1 %v6344_v8  ;;  %4827 = vmatprep.subr.bf16.mxu0 %v6423_v24  ;;  %v6461_v8 = vld [vmem:[#allocation7 + $0x180] ss:$12 sps:$4 sm:$0xff]  }
 0x14a   :  { %4547 = vmatprep.subr.bf16.mxu1 %v6348_v9  ;;  %v6444_v24 = vld [vmem:[#allocation5 + $0x3ec] ss:$48 sps:$4 sm:$0xff]  }
 0x14c   :  { %2499 = vmatmul.mubr.f32.vlgmr.msra.gmra.mrb[8].mxu1 %v7092_v13  ;;  %4829 = vmatpush1.bf16.msra.mxu0 %v6425_v27  ;;  %v6446_v27 = vld [vmem:[#allocation5 + $0x3e8] ss:$48 sps:$4 sm:$0xff]  }
 0x14d   :  { %4549 = vmatpush1.bf16.msra.mxu1 %v6350_v10  ;;  %2504 = vmatprep.mubr.f32.mxu1 %v7095_v15 }
 0x14e   :  { %4551 = vmatprep.subr.bf16.mxu1 %v6354_v60  ;;  %4831 = vmatprep.subr.bf16.mxu0 %v6429_v28  ;;  %v6465_v60 = vld [vmem:[#allocation7 + $0x19c] ss:$12 sps:$4 sm:$0xff]  }
 0x14f   :  { %v6447_v28 = vld [vmem:[#allocation5 + $0x44c] ss:$48 sps:$4 sm:$0xff]  }
 0x150   :  { %2505 = vmatmul.mubr.f32.gmra.mrb[10].mxu1 %v7098_v20  ;;  %4833 = vmatpush1.bf16.msra.mxu0 %v6431_v32  ;;  %v6485_v32 = vld [vmem:[#allocation7 + $0x1e0] ss:$12 sps:$4 sm:$0xff]  }
 0x151   :  { %4553 = vmatpush1.bf16.msra.mxu1 %v6356_v12  ;;  %2575 = vmatprep.mubr.f32.mxu1 %v6967_v5 }
 0x152   :  { %4555 = vmatprep.subr.bf16.mxu1 %v6360_v14  ;;  %4835 = vmatprep.subr.bf16.mxu0 %v6459_v33  ;;  %v6467_v14 = vld [vmem:[#allocation7 + $0x198] ss:$12 sps:$4 sm:$0xff]   ;;  %v6450_v33 = vld [vmem:[#allocation5 + $0x4ac] ss:$48 sps:$4 sm:$0xff]  }
 0x155   :  { %4557 = vmatpush1.bf16.msra.mxu1 %v6362_v21  ;;  %v6471_v21 = vld [vmem:[#allocation7 + $0x1b4] ss:$12 sps:$4 sm:$0xff]  }
 0x156   :  { %4559 = vmatprep.subr.bf16.mxu1 %v6366_v22  ;;  %v6473_v22 = vld [vmem:[#allocation7 + $0x1b0] ss:$12 sps:$4 sm:$0xff]  }
 0x159   :  { %4561 = vmatpush1.bf16.msra.mxu1 %v6368_v25  ;;  %v6477_v25 = vld [vmem:[#allocation7 + $0x1cc] ss:$12 sps:$4 sm:$0xff]  }
 0x15a   :  { %4563 = vmatprep.subr.bf16.mxu1 %v6372_v26  ;;  %v6479_v26 = vld [vmem:[#allocation7 + $0x1c8] ss:$12 sps:$4 sm:$0xff]  }
 0x15d   :  { %4565 = vmatpush1.bf16.msra.mxu1 %v6374_v29  ;;  %v6483_v29 = vld [vmem:[#allocation7 + $0x1e4] ss:$12 sps:$4 sm:$0xff]  }
 0x15e   :  { %4567 = vmatprep.subr.bf16.mxu1 %v6378_v31  ;;  %v6449_v31 = vld [vmem:[#allocation5 + $0x448] ss:$48 sps:$4 sm:$0xff]  }
 0x161   :  { %4569 = vmatpush1.bf16.msra.mxu1 %v6380_v34 }
 0x162   :  { %4571 = vmatprep.subr.bf16.mxu1 %v6384_v36  ;;  %v6489_v36 = vld [vmem:[#allocation7 + $0x1fc] ss:$12 sps:$4 sm:$0xff]  }
 0x165   :  { %4573 = vmatpush1.bf16.msra.mxu1 %v6386_v37 }
 0x166   :  { %4575 = vmatprep.subr.bf16.mxu1 %v6390_v38  ;;  %v6491_v38 = vld [vmem:[#allocation7 + $0x1f8] ss:$12 sps:$4 sm:$0xff]  }
 0x169   :  { %4577 = vmatpush1.bf16.msra.mxu1 %v6392_v39  ;;  %v6452_v39 = vld [vmem:[#allocation5 + $0x4a8] ss:$48 sps:$4 sm:$0xff]  }
 0x16a   :  { %4675 = vmatprep.subr.bf16.mxu1 %v6396_v40  ;;  %v6495_v40 = vld [vmem:[#allocation7 + $0x214] ss:$12 sps:$4 sm:$0xff]  }
 0x16c   :  { %2576 = vmatmul.mubr.f32.vlgmr.msra.gmra.mrb[8].mxu1 %v7102_v30 }
 0x16d   :  { %4677 = vmatpush1.bf16.msra.mxu1 %v6398_v41  ;;  %2581 = vmatprep.mubr.f32.mxu1 %v6967_v5 }
 0x16e   :  { %4679 = vmatprep.subr.bf16.mxu1 %v6402_v42  ;;  %v6453_v42 = vld [vmem:[#allocation5 + $0x50c] ss:$48 sps:$4 sm:$0xff]  }
 0x170   :  { %2582 = vmatmul.mubr.f32.gmra.mrb[10].mxu1 %v7106_v47 }
 0x171   :  { %4681 = vmatpush1.bf16.msra.mxu1 %v6404_v43  ;;  %2806 = vmatprep.mubr.f32.mxu1 %v7086_v17  ;;  %v1915_v17 = vrot.slane %v7115_v53, %v7113_v52 }
 0x172   :  { %4683 = vmatprep.subr.bf16.mxu1 %v6408_v44  ;;  %v6455_v44 = vld [vmem:[#allocation5 + $0x508] ss:$48 sps:$4 sm:$0xff]  }
 0x175   :  { %4685 = vmatpush1.bf16.msra.mxu1 %v6410_v46  ;;  %v6456_v46 = vld [vmem:[#allocation5 + $0x56c] ss:$48 sps:$4 sm:$0xff]  }
 0x176   :  { %4687 = vmatprep.subr.bf16.mxu1 %v6414_v35  ;;  %v6501_v35 = vld [vmem:[#allocation7 + $0x22c] ss:$12 sps:$4 sm:$0xff]  }
 0x179   :  { %4689 = vmatpush1.bf16.msra.mxu1 %v6416_v49  ;;  %v6458_v49 = vld [vmem:[#allocation5 + $0x568] ss:$48 sps:$4 sm:$0xff]  }
 0x17a   :  { %4691 = vmatprep.subr.bf16.mxu1 %v6420_v50  ;;  %v6503_v50 = vld [vmem:[#allocation7 + $0x228] ss:$12 sps:$4 sm:$0xff]  }
 0x17d   :  { %4693 = vmatpush1.bf16.msra.mxu1 %v6422_v51  ;;  %v6462_v51 = vld [vmem:[#allocation5 + $0x5cc] ss:$48 sps:$4 sm:$0xff]  }
 0x17e   :  { %4695 = vmatprep.subr.bf16.mxu1 %v6426_v54  ;;  %v6507_v54 = vld [vmem:[#allocation7 + $0x244] ss:$12 sps:$4 sm:$0xff]  }
 0x17f   :  { %v2115_v61 = vpop.f32.mrb[0].mxu1 }
 0x180   :  { %v7124_v62 = vadd.f32 %v2115_v61, %v1915_v17  ;;  %v2117_v63 = vpop.f32.mrb[1].mxu1  ;;  %v6515_v61 = vld [vmem:[#allocation7 + $0x258] ss:$12 sps:$4 sm:$0xff]  }
 0x181   :  { %v7126_v3 = vadd.f32 %v2117_v63, %v1919_v59  ;;  %4697 = vmatpush1.bf16.msra.mxu1 %v6428_v56  ;;  %v6464_v56 = vld [vmem:[#allocation5 + $0x5c8] ss:$48 sps:$4 sm:$0xff]  }
 0x182   :  { %4699 = vmatprep.subr.bf16.mxu1 %v6432_v57  ;;  %v2896_v9 = vmax.f32 %v7124_v62, 0.0  ;;  %v6513_v57 = vld [vmem:[#allocation7 + $0x25c] ss:$12 sps:$4 sm:$0xff]   ;;  %v6570_v62 = vld [vmem:[#allocation7 + $0x1b8] ss:$12 sps:$4 sm:$0xff]  }
 0x183   :  { %v2897_v4 = vmax.f32 %v7126_v3, 0.0  ;;  %v2121_v6 = vpop.f32.mrb[2].mxu1  ;;  %v6470_v63 = vld [vmem:[#allocation5 + $0x628] ss:$48 sps:$4 sm:$0xff]  }
 0x184   :  { %v7130_v58 = vadd.f32 %v2121_v6, %v1915_v17  ;;  %v2123_v10 = vpop.f32.mrb[3].mxu1  ;;  %v6509_v17 = vld [vmem:[#allocation7 + $0x240] ss:$12 sps:$4 sm:$0xff]   ;;  %v6519_v6 = vld [vmem:[#allocation7 + $0x270] ss:$12 sps:$4 sm:$0xff]  }
 0x185   :  { %v7132_v0 = vadd.f32 %v2123_v10, %v1919_v59  ;;  %4701 = vmatpush1.bf16.msra.mxu1 %v6434_v1  ;;  %3000 = vmatprep.mubr.f32.mxu0 %v2897_v4  ;;  %v6468_v59 = vld [vmem:[#allocation5 + $0x62c] ss:$48 sps:$4 sm:$0xff]   ;;  %v6517_v1 = vld [vmem:[#allocation7 + $0x274] ss:$12 sps:$4 sm:$0xff]  }
 0x186   :  { %3001 = vmatmul.mubr.f32.vlgmr.msra.gmra.mrb[8].mxu0 %v2896_v9  ;;  %4703 = vmatprep.subr.bf16.mxu1 %v6435_v2  ;;  %v2908_v16 = vmax.f32 %v7130_v58, 0.0  ;;  %v7144_v34 = vpop.f32.mrb[0].mxu0  ;;  %v6474_v2 = vld [vmem:[#allocation5 + $0x68c] ss:$48 sps:$4 sm:$0xff]   ;;  %v6576_v58 = vld [vmem:[#allocation7 + $0x2a8] ss:$12 sps:$4 sm:$0xff]  }
 0x187   :  { %v2909_v12 = vmax.f32 %v7132_v0, 0.0  ;;  %4837 = vmatpush1.bf16.msra.mxu0 %v6461_v8  ;;  %v7146_v37 = vpop.f32.mrb[1].mxu0  ;;  %v6480_v8 = vld [vmem:[#allocation5 + $0x6ec] ss:$48 sps:$4 sm:$0xff]  }
 0x188   :  { %4839 = vmatprep.subr.bf16.mxu0 %v6465_v60  ;;  %v6522_v10 = vld [vmem:[#allocation7 + $0x28c] ss:$12 sps:$4 sm:$0xff]   ;;  %v6572_v0 = vld [vmem:[#allocation7 + $0x37c] ss:$12 sps:$4 sm:$0xff]  }
 0x189   :  { %4705 = vmatpush1.bf16.msra.mxu1 %v6437_v7  ;;  %3006 = vmatprep.mubr.f32.mxu0 %v2909_v12  ;;  %v6476_v7 = vld [vmem:[#allocation5 + $0x688] ss:$48 sps:$4 sm:$0xff]  }
 0x18a   :  { %3007 = vmatmul.mubr.f32.gmra.mrb[10].mxu0 %v2908_v16  ;;  %4707 = vmatprep.subr.bf16.mxu1 %v6438_v11  ;;  %v7148_v41 = vpop.f32.mrb[2].mxu0  ;;  %v6524_v11 = vld [vmem:[#allocation7 + $0x288] ss:$12 sps:$4 sm:$0xff]  }
 0x18b   :  { %4841 = vmatpush1.bf16.msra.mxu0 %v6467_v14  ;;  %v7150_v43 = vpop.f32.mrb[3].mxu0  ;;  %v6482_v60 = vld [vmem:[#allocation5 + $0x6e8] ss:$48 sps:$4 sm:$0xff]   ;;  %v6527_v14 = vld [vmem:[#allocation7 + $0x2a4] ss:$12 sps:$4 sm:$0xff]  }
 0x18c   :  { %4843 = vmatprep.subr.bf16.mxu0 %v6471_v21  ;;  %v6492_v21 = vld [vmem:[#allocation5 + $0x7ac] ss:$48 sps:$4 sm:$0xff]  }
 0x18d   :  { %4709 = vmatpush1.bf16.msra.mxu1 %v6440_v19  ;;  %v6486_v19 = vld [vmem:[#allocation5 + $0x74c] ss:$48 sps:$4 sm:$0xff]  }
 0x18e   :  { %4711 = vmatprep.subr.bf16.mxu1 %v6441_v18  ;;  %v6529_v18 = vld [vmem:[#allocation7 + $0x2a0] ss:$12 sps:$4 sm:$0xff]  }
 0x18f   :  { %4845 = vmatpush1.bf16.msra.mxu0 %v6473_v22  ;;  %v6532_v22 = vld [vmem:[#allocation7 + $0x2bc] ss:$12 sps:$4 sm:$0xff]  }
 0x190   :  { %4847 = vmatprep.subr.bf16.mxu0 %v6477_v25  ;;  %v6500_v25 = vld [vmem:[#allocation5 + $0x808] ss:$48 sps:$4 sm:$0xff]  }
 0x191   :  { %4713 = vmatpush1.bf16.msra.mxu1 %v6443_v23  ;;  %v6534_v23 = vld [vmem:[#allocation7 + $0x2b8] ss:$12 sps:$4 sm:$0xff]  }
 0x192   :  { %4715 = vmatprep.subr.bf16.mxu1 %v6444_v24  ;;  %v6498_v24 = vld [vmem:[#allocation5 + $0x80c] ss:$48 sps:$4 sm:$0xff]  }
 0x193   :  { %4849 = vmatpush1.bf16.msra.mxu0 %v6479_v26  ;;  %v6539_v26 = vld [vmem:[#allocation7 + $0x2d0] ss:$12 sps:$4 sm:$0xff]  }
 0x194   :  { %4851 = vmatprep.subr.bf16.mxu0 %v6483_v29  ;;  %v6544_v29 = vld [vmem:[#allocation7 + $0x2e8] ss:$12 sps:$4 sm:$0xff]  }
 0x195   :  { %4717 = vmatpush1.bf16.msra.mxu1 %v6446_v27  ;;  %v6504_v27 = vld [vmem:[#allocation5 + $0x86c] ss:$48 sps:$4 sm:$0xff]  }
 0x196   :  { %4719 = vmatprep.subr.bf16.mxu1 %v6447_v28  ;;  %v6542_v28 = vld [vmem:[#allocation7 + $0x2ec] ss:$12 sps:$4 sm:$0xff]  }
 0x197   :  { %4853 = vmatpush1.bf16.msra.mxu0 %v6485_v32  ;;  %v6547_v32 = vld [vmem:[#allocation7 + $0x304] ss:$12 sps:$4 sm:$0xff]  }
 0x198   :  { %4855 = vmatprep.subr.bf16.mxu0 %v6489_v36  ;;  %v6512_v36 = vld [vmem:[#allocation5 + $0x8c8] ss:$48 sps:$4 sm:$0xff]  }
 0x199   :  { %4721 = vmatpush1.bf16.msra.mxu1 %v6449_v31  ;;  %v6506_v31 = vld [vmem:[#allocation5 + $0x868] ss:$48 sps:$4 sm:$0xff]  }
 0x19a   :  { %4723 = vmatprep.subr.bf16.mxu1 %v6450_v33  ;;  %v6510_v33 = vld [vmem:[#allocation5 + $0x8cc] ss:$48 sps:$4 sm:$0xff]  }
 0x19b   :  { %4857 = vmatpush1.bf16.msra.mxu0 %v6491_v38  ;;  %v6516_v38 = vld [vmem:[#allocation7 + $0xc8] ss:$12 sps:$4 sm:$0xff]  }
 0x19c   :  { %4859 = vmatprep.subr.bf16.mxu0 %v6495_v40  ;;  %v6521_v40 = vld [vmem:[#allocation7 + $0xe0] ss:$12 sps:$4 sm:$0xff]  }
 0x19d   :  { %4725 = vmatpush1.bf16.msra.mxu1 %v6452_v39  ;;  %v6520_v39 = vld [vmem:[#allocation7 + $0x8] ss:$12 sps:$4 sm:$0xff]  }
 0x19e   :  { %4727 = vmatprep.subr.bf16.mxu1 %v6453_v42  ;;  %v6525_v42 = vld [vmem:[#allocation7 + $0x20] ss:$12 sps:$4 sm:$0xff]  }
 0x19f   :  { %4861 = vmatpush1.bf16.msra.mxu0 %v6497_v45  ;;  %v6530_v45 = vld [vmem:[#allocation7 + $0x38] ss:$12 sps:$4 sm:$0xff]  }
 0x1a0   :  { %4863 = vmatprep.subr.bf16.mxu0 %v6501_v35  ;;  %v6535_v35 = vld [vmem:[#allocation7 + $0x50] ss:$12 sps:$4 sm:$0xff]  }
 0x1a1   :  { %4729 = vmatpush1.bf16.msra.mxu1 %v6455_v44  ;;  %v6526_v44 = vld [vmem:[#allocation7 + $0xf8] ss:$12 sps:$4 sm:$0xff]  }
 0x1a2   :  { %4731 = vmatprep.subr.bf16.mxu1 %v6456_v46  ;;  %v6531_v46 = vld [vmem:[#allocation7 + $0x110] ss:$12 sps:$4 sm:$0xff]  }
 0x1a3   :  { %4865 = vmatpush1.bf16.msra.mxu0 %v6503_v50  ;;  %v1926_v50 = vsub.s32 3, %v7110_v48 }
 0x1a4   :  { %4867 = vmatprep.subr.bf16.mxu0 %v6507_v54  ;;  %v6545_v54 = vld [vmem:[#allocation7 + $0x80] ss:$12 sps:$4 sm:$0xff]  }
 0x1a5   :  { %4733 = vmatpush1.bf16.msra.mxu1 %v6458_v49  ;;  %v6536_v49 = vld [vmem:[#allocation7 + $0x128] ss:$12 sps:$4 sm:$0xff]  }
 0x1a6   :  { %4735 = vmatprep.subr.bf16.mxu1 %v6462_v51  ;;  %v1927_v51 = vrot.slane %v7115_v53, %v1926_v50 }
 0x1a7   :  { %4869 = vmatpush1.bf16.msra.mxu0 %v6509_v17  ;;  %v6546_v17 = vld [vmem:[#allocation7 + $0x158] ss:$12 sps:$4 sm:$0xff]  }
 0x1a8   :  { %4871 = vmatprep.subr.bf16.mxu0 %v6513_v57 }
 0x1a9   :  { %4737 = vmatpush1.bf16.msra.mxu1 %v6464_v56 }
 0x1aa   :  { %4739 = vmatprep.subr.bf16.mxu1 %v6468_v59 }
 0x1ab   :  { %4873 = vmatpush1.bf16.msra.mxu0 %v6515_v61 }
 0x1ac   :  { %2807 = vmatmul.mubr.f32.vlgmr.msra.gmra.mrb[12].mxu1 %v7092_v13  ;;  %4875 = vmatprep.subr.bf16.mxu0 %v6517_v1  ;;  %v6488_v13 = vld [vmem:[#allocation5 + $0x748] ss:$48 sps:$4 sm:$0xff]  }
 0x1ad   :  { %4741 = vmatpush1.bf16.msra.mxu1 %v6470_v63  ;;  %2812 = vmatprep.mubr.f32.mxu1 %v7095_v15  ;;  %v6494_v15 = vld [vmem:[#allocation5 + $0x7a8] ss:$48 sps:$4 sm:$0xff]  }
 0x1ae   :  { %4743 = vmatprep.subr.bf16.mxu1 %v6474_v2  ;;  %v6550_v1 = vld [vmem:[#allocation7 + $0x98] ss:$12 sps:$4 sm:$0xff]   ;;  %v6551_v2 = vld [vmem:[#allocation7 + $0x170] ss:$12 sps:$4 sm:$0xff]  }
 0x1af   :  { %4877 = vmatpush1.bf16.msra.mxu0 %v6519_v6 }
 0x1b0   :  { %2813 = vmatmul.mubr.f32.gmra.mrb[14].mxu1 %v7098_v20  ;;  %4879 = vmatprep.subr.bf16.mxu0 %v6522_v10  ;;  %v6537_v20 = vld [vmem:[#allocation7 + $0x2d4] ss:$12 sps:$4 sm:$0xff]  }
 0x1b1   :  { %4745 = vmatpush1.bf16.msra.mxu1 %v6476_v7  ;;  %2883 = vmatprep.mubr.f32.mxu1 %v6967_v5 }
 0x1b2   :  { %4747 = vmatprep.subr.bf16.mxu1 %v6480_v8  ;;  %v6549_v8 = vld [vmem:[#allocation7 + $0x300] ss:$12 sps:$4 sm:$0xff]  }
 0x1b3   :  { %4881 = vmatpush1.bf16.msra.mxu0 %v6524_v11 }
 0x1b4   :  { %4883 = vmatprep.subr.bf16.mxu0 %v6527_v14 }
 0x1b5   :  { %4749 = vmatpush1.bf16.msra.mxu1 %v6482_v60 }
 0x1b6   :  { %4751 = vmatprep.subr.bf16.mxu1 %v6486_v19  ;;  %v6552_v19 = vld [vmem:[#allocation7 + $0x31c] ss:$12 sps:$4 sm:$0xff]  }
 0x1b7   :  { %4885 = vmatpush1.bf16.msra.mxu0 %v6529_v18  ;;  %v6556_v18 = vld [vmem:[#allocation7 + $0x248] ss:$12 sps:$4 sm:$0xff]  }
 0x1b8   :  { %4887 = vmatprep.subr.bf16.mxu0 %v6532_v22  ;;  %v6554_v22 = vld [vmem:[#allocation7 + $0x318] ss:$12 sps:$4 sm:$0xff]  }
 0x1b9   :  { %4753 = vmatpush1.bf16.msra.mxu1 %v6488_v13  ;;  %v6555_v13 = vld [vmem:[#allocation7 + $0xb0] ss:$12 sps:$4 sm:$0xff]  }
 0x1ba   :  { %4755 = vmatprep.subr.bf16.mxu1 %v6492_v21 }
 0x1bb   :  { %4889 = vmatpush1.bf16.msra.mxu0 %v6534_v23  ;;  %v6557_v23 = vld [vmem:[#allocation7 + $0x334] ss:$12 sps:$4 sm:$0xff]  }
 0x1bc   :  { %4891 = vmatprep.subr.bf16.mxu0 %v6537_v20  ;;  %v6561_v20 = vld [vmem:[#allocation7 + $0x260] ss:$12 sps:$4 sm:$0xff]  }
 0x1bd   :  { %4757 = vmatpush1.bf16.msra.mxu1 %v6494_v15 }
 0x1be   :  { %4759 = vmatprep.subr.bf16.mxu1 %v6498_v24  ;;  %v6560_v24 = vld [vmem:[#allocation7 + $0x188] ss:$12 sps:$4 sm:$0xff]  }
 0x1bf   :  { %4893 = vmatpush1.bf16.msra.mxu0 %v6539_v26  ;;  %v6562_v26 = vld [vmem:[#allocation7 + $0x34c] ss:$12 sps:$4 sm:$0xff]  }
 0x1c0   :  { %4895 = vmatprep.subr.bf16.mxu0 %v6542_v28  ;;  %v6566_v28 = vld [vmem:[#allocation7 + $0x278] ss:$12 sps:$4 sm:$0xff]  }
 0x1c1   :  { %4761 = vmatpush1.bf16.msra.mxu1 %v6500_v25  ;;  %v6559_v25 = vld [vmem:[#allocation7 + $0x330] ss:$12 sps:$4 sm:$0xff]  }
 0x1c2   :  { %4763 = vmatprep.subr.bf16.mxu1 %v6504_v27  ;;  %v6565_v27 = vld [vmem:[#allocation7 + $0x1a0] ss:$12 sps:$4 sm:$0xff]  }
 0x1c3   :  { %4897 = vmatpush1.bf16.msra.mxu0 %v6544_v29  ;;  %v6564_v29 = vld [vmem:[#allocation7 + $0x348] ss:$12 sps:$4 sm:$0xff]  }
 0x1c4   :  { %4899 = vmatprep.subr.bf16.mxu0 %v6547_v32  ;;  %v6569_v32 = vld [vmem:[#allocation7 + $0x360] ss:$12 sps:$4 sm:$0xff]  }
 0x1c5   :  { %4765 = vmatpush1.bf16.msra.mxu1 %v6506_v31  ;;  %v6567_v31 = vld [vmem:[#allocation7 + $0x364] ss:$12 sps:$4 sm:$0xff]  }
 0x1c6   :  { %4767 = vmatprep.subr.bf16.mxu1 %v6510_v33  ;;  %v6575_v33 = vld [vmem:[#allocation7 + $0x1d0] ss:$12 sps:$4 sm:$0xff]  }
 0x1c9   :  { %4769 = vmatpush1.bf16.msra.mxu1 %v6512_v36 }
 0x1ca   :  { %5155 = vmatprep.subr.bf16.mxu1 %v6516_v38  ;;  %v6577_v38 = vld [vmem:[#allocation7 + $0x394] ss:$12 sps:$4 sm:$0xff]  }
 0x1cc   :  { %2884 = vmatmul.mubr.f32.vlgmr.msra.gmra.mrb[12].mxu1 %v7102_v30  ;;  %v7162_v30 = vsub.s32 2, %v7110_v48 }
 0x1cd   :  { %5157 = vmatpush3.bf16.msra.mxu1 %v6520_v39  ;;  %2889 = vmatprep.mubr.f32.mxu1 %v6967_v5  ;;  %v6540_v5 = vld [vmem:[#allocation7 + $0x68] ss:$12 sps:$4 sm:$0xff]  }
 0x1ce   :  { %5159 = vmatprep.subr.bf16.mxu1 %v6521_v40  ;;  %v1923_v3 = vrot.slane %v7115_v53, %v7162_v30  ;;  %v6580_v40 = vld [vmem:[#allocation7 + $0x1e8] ss:$12 sps:$4 sm:$0xff]  }
 0x1d0   :  { %2890 = vmatmul.mubr.f32.gmra.mrb[14].mxu1 %v7106_v47  ;;  %v6541_v47 = vld [vmem:[#allocation7 + $0x140] ss:$12 sps:$4 sm:$0xff]  }
 0x1d1   :  { %5161 = vmatpush3.bf16.msra.mxu1 %v6525_v42  ;;  %3462 = vmatprep.mubr.f32.mxu1 %v2897_v4  ;;  %v1934_v4 = vsub.s32 5, %v7110_v48 }
 0x1d2   :  { %5163 = vmatprep.subr.bf16.mxu1 %v6526_v44  ;;  %v6581_v44 = vld [vmem:[#allocation7 + $0x2c0] ss:$12 sps:$4 sm:$0xff]  }
 0x1d3   :  { %v7174_v61 = vrot.slane %v7115_v53, %v1934_v4  ;;  %v6591_v4 = vld [vmem:[#allocation7 + $0x2f0] ss:$12 sps:$4 sm:$0xff]  }
 0x1d5   :  { %5165 = vmatpush3.bf16.msra.mxu1 %v6530_v45  ;;  %v7181_v14 = vadd.f32 %v7146_v37, %v7174_v61  ;;  %v6579_v45 = vld [vmem:[#allocation7 + $0x390] ss:$12 sps:$4 sm:$0xff]  }
 0x1d6   :  { %5167 = vmatprep.subr.bf16.mxu1 %v6531_v46  ;;  %v6582_v46 = vld [vmem:[#allocation7 + $0x3ac] ss:$12 sps:$4 sm:$0xff]  }
 0x1d7   :  { %v2901_v37 = vmax.f32 %v7181_v14, 0.0  ;;  %v6620_v14 = vld [vmem:[#allocation7 + $0x368] ss:$12 sps:$4 sm:$0xff]  }
 0x1d9   :  { %5169 = vmatpush3.bf16.msra.mxu1 %v6535_v35  ;;  %v6585_v35 = vld [vmem:[#allocation7 + $0x200] ss:$12 sps:$4 sm:$0xff]  }
 0x1da   :  { %5171 = vmatprep.subr.bf16.mxu1 %v6536_v49  ;;  %v6586_v49 = vld [vmem:[#allocation7 + $0x2d8] ss:$12 sps:$4 sm:$0xff]  }
 0x1dd   :  { %5173 = vmatpush3.bf16.msra.mxu1 %v6540_v5  ;;  %v6584_v5 = vld [vmem:[#allocation7 + $0x3a8] ss:$12 sps:$4 sm:$0xff]  }
 0x1de   :  { %5175 = vmatprep.subr.bf16.mxu1 %v6541_v47  ;;  %v6587_v47 = vld [vmem:[#allocation7 + $0x3c4] ss:$12 sps:$4 sm:$0xff]  }
 0x1df   :  { %v2269_v56 = vpop.f32.mrb[4].mxu1 }
 0x1e0   :  { %v7171_v57 = vadd.f32 %v2269_v56, %v1923_v3  ;;  %v2271_v59 = vpop.f32.mrb[5].mxu1  ;;  %v6596_v56 = vld [vmem:[#allocation7 + $0x3c8] ss:$12 sps:$4 sm:$0xff]  }
 0x1e1   :  { %v5351_v63 = vadd.f32 %v2271_v59, %v1927_v51  ;;  %5177 = vmatpush3.bf16.msra.mxu1 %v6545_v54  ;;  %v6592_v54 = vld [vmem:[#allocation7 + $0x3dc] ss:$12 sps:$4 sm:$0xff]   ;;  %v6594_v59 = vld [vmem:[#allocation7 + $0x3d8] ss:$12 sps:$4 sm:$0xff]  }
 0x1e2   :  { %5179 = vmatprep.subr.bf16.mxu1 %v6546_v17  ;;  %v2898_v10 = vmax.f32 %v7171_v57, 0.0  ;;  %v6595_v17 = vld [vmem:[#allocation7 + $0x230] ss:$12 sps:$4 sm:$0xff]   ;;  %v6610_v57 = vld [vmem:[#allocation7 + $0x338] ss:$12 sps:$4 sm:$0xff]  }
 0x1e3   :  { %v2899_v6 = vmax.f32 %v5351_v63, 0.0  ;;  %v2275_v7 = vpop.f32.mrb[6].mxu1  ;;  %v6597_v63 = vld [vmem:[#allocation7 + $0x3f4] ss:$12 sps:$4 sm:$0xff]  }
 0x1e4   :  { %v7177_v11 = vadd.f32 %v2275_v7, %v1923_v3  ;;  %v2277_v60 = vpop.f32.mrb[7].mxu1  ;;  %v6590_v3 = vld [vmem:[#allocation7 + $0x218] ss:$12 sps:$4 sm:$0xff]  }
 0x1e5   :  { %v7183_v53 = vadd.f32 %v2277_v60, %v1927_v51  ;;  %3077 = vmatprep.mubr.f32.mxu0 %v2899_v6  ;;  %5181 = vmatpush3.bf16.msra.mxu1 %v6550_v1  ;;  %v6589_v51 = vld [vmem:[#allocation7 + $0x3c0] ss:$12 sps:$4 sm:$0xff]   ;;  %v6600_v1 = vld [vmem:[#allocation7 + $0x308] ss:$12 sps:$4 sm:$0xff]   ;;  %v6606_v60 = vld [vmem:[#allocation7 + $0x3f8] ss:$12 sps:$4 sm:$0xff]  }
 0x1e6   :  { %3078 = vmatmul.mubr.f32.vlgmr.msra.gmra.mrb[8].mxu0 %v2898_v10  ;;  %5183 = vmatprep.subr.bf16.mxu1 %v6551_v2  ;;  %v2910_v15 = vmax.f32 %v7177_v11, 0.0  ;;  %v6601_v2 = vld [vmem:[#allocation7 + $0x3e0] ss:$12 sps:$4 sm:$0xff]   ;;  %v6614_v11 = vld [vmem:[#allocation7 + $0x438] ss:$12 sps:$4 sm:$0xff]  }
 0x1e7   :  { %v2911_v21 = vmax.f32 %v7183_v53, 0.0  ;;  %4901 = vmatpush1.bf16.msra.mxu0 %v6549_v8  ;;  %v6602_v7 = vld [vmem:[#allocation7 + $0x40c] ss:$12 sps:$4 sm:$0xff]  }
 0x1e8   :  { %4903 = vmatprep.subr.bf16.mxu0 %v6552_v19  ;;  %v6605_v8 = vld [vmem:[#allocation7 + $0x320] ss:$12 sps:$4 sm:$0xff]   ;;  %v6604_v19 = vld [vmem:[#allocation7 + $0x408] ss:$12 sps:$4 sm:$0xff]  }
 0x1e9   :  { %3083 = vmatprep.mubr.f32.mxu0 %v2911_v21  ;;  %5185 = vmatpush3.bf16.msra.mxu1 %v6555_v13  ;;  %v6607_v13 = vld [vmem:[#allocation7 + $0x424] ss:$12 sps:$4 sm:$0xff]   ;;  %v6609_v53 = vld [vmem:[#allocation7 + $0x420] ss:$12 sps:$4 sm:$0xff]  }
 0x1ea   :  { %3084 = vmatmul.mubr.f32.gmra.mrb[10].mxu0 %v2910_v15  ;;  %5187 = vmatprep.subr.bf16.mxu1 %v6556_v18  ;;  %v6612_v18 = vld [vmem:[#allocation7 + $0x43c] ss:$12 sps:$4 sm:$0xff]  }
 0x1eb   :  { %4905 = vmatpush1.bf16.msra.mxu0 %v6554_v22  ;;  %3154 = vmatprep.mubr.f32.mxu0 %v2901_v37  ;;  %v6616_v22 = vld [vmem:[#allocation7 + $0x428] ss:$12 sps:$4 sm:$0xff]  }
 0x1ec   :  { %3463 = vmatmul.mubr.f32.vlgmr.msra.gmra.mrb[16].mxu1 %v2896_v9  ;;  %4907 = vmatprep.subr.bf16.mxu0 %v6557_v23  ;;  %v6571_v9 = vld [vmem:[#allocation7 + $0x290] ss:$12 sps:$4 sm:$0xff]   ;;  %v6617_v23 = vld [vmem:[#allocation7 + $0x454] ss:$12 sps:$4 sm:$0xff]  }
 0x1ed   :  { %3467 = vmatprep.mubr.f32.mxu1 %v2909_v12  ;;  %5189 = vmatpush3.bf16.msra.mxu1 %v6560_v24  ;;  %v7202_v12 = vpop.f32.mrb[4].mxu0  ;;  %v6619_v24 = vld [vmem:[#allocation7 + $0x450] ss:$12 sps:$4 sm:$0xff]  }
 0x1ee   :  { %5191 = vmatprep.subr.bf16.mxu1 %v6561_v20  ;;  %v7204_v36 = vpop.f32.mrb[5].mxu0  ;;  %v7219_v20 = vld [vmem:[#allocation8] ss:$4 sm:$0xff] }
 0x1ef   :  { %4909 = vmatpush1.bf16.msra.mxu0 %v6559_v25  ;;  %v7206_v39 = vpop.f32.mrb[6].mxu0 }
 0x1f0   :  { %3468 = vmatmul.mubr.f32.gmra.mrb[18].mxu1 %v2908_v16  ;;  %4911 = vmatprep.subr.bf16.mxu0 %v6562_v26  ;;  %v6574_v16 = vld [vmem:[#allocation7 + $0x378] ss:$12 sps:$4 sm:$0xff]   ;;  %v7208_v42 = vpop.f32.mrb[7].mxu0 }
 0x1f1   :  { %5193 = vmatpush3.bf16.msra.mxu1 %v6565_v27  ;;  %3537 = vmatprep.mubr.f32.mxu1 %v2899_v6  ;;  %v6599_v6 = vld [vmem:[#allocation7 + $0x3f0] ss:$12 sps:$4 sm:$0xff]   ;;  %v6622_v26 = vld [vmem:[#allocation7 + $0x46c] ss:$12 sps:$4 sm:$0xff]  }
 0x1f2   :  { %5195 = vmatprep.subr.bf16.mxu1 %v6566_v28  ;;  %v6625_v27 = vld [vmem:[#allocation7 + $0x380] ss:$12 sps:$4 sm:$0xff]   ;;  %v6626_v28 = vld [vmem:[#allocation7 + $0x458] ss:$12 sps:$4 sm:$0xff]  }
 0x1f3   :  { %4913 = vmatpush1.bf16.msra.mxu0 %v6564_v29  ;;  %v6624_v29 = vld [vmem:[#allocation7 + $0x468] ss:$12 sps:$4 sm:$0xff]  }
 0x1f4   :  { %4915 = vmatprep.subr.bf16.mxu0 %v6567_v31 }
 0x1f5   :  { %5197 = vmatpush3.bf16.msra.mxu1 %v6570_v62  ;;  %v6627_v62 = vld [vmem:[#allocation7 + $0x484] ss:$12 sps:$4 sm:$0xff]  }
 0x1f6   :  { %5199 = vmatprep.subr.bf16.mxu1 %v6571_v9  ;;  %v5357_v9 = vadd.f32 %v7150_v43, %v7174_v61  ;;  %v6634_v43 = vld [vmem:[#allocation7 + $0x498] ss:$12 sps:$4 sm:$0xff]  }
 0x1f7   :  { %4917 = vmatpush1.bf16.msra.mxu0 %v6569_v32  ;;  %v6630_v32 = vld [vmem:[#allocation7 + $0x398] ss:$12 sps:$4 sm:$0xff]  }
 0x1f8   :  { %4919 = vmatprep.subr.bf16.mxu0 %v6572_v0  ;;  %v6631_v0 = vld [vmem:[#allocation7 + $0x470] ss:$12 sps:$4 sm:$0xff]  }
 0x1f9   :  { %5201 = vmatpush3.bf16.msra.mxu1 %v6575_v33  ;;  %v6629_v33 = vld [vmem:[#allocation7 + $0x480] ss:$12 sps:$4 sm:$0xff]  }
 0x1fa   :  { %5203 = vmatprep.subr.bf16.mxu1 %v6576_v58 }
 0x1fb   :  { %4921 = vmatpush1.bf16.msra.mxu0 %v6574_v16 }
 0x1fc   :  { %4923 = vmatprep.subr.bf16.mxu0 %v6577_v38  ;;  %v6632_v38 = vld [vmem:[#allocation7 + $0x49c] ss:$12 sps:$4 sm:$0xff]  }
 0x1fd   :  { %5205 = vmatpush3.bf16.msra.mxu1 %v6580_v40  ;;  %v2913_v40 = vmax.f32 %v5357_v9, 0.0 }
 0x1fe   :  { %5207 = vmatprep.subr.bf16.mxu1 %v6581_v44  ;;  %v6635_v44 = vld [vmem:[#allocation7 + $0x3b0] ss:$12 sps:$4 sm:$0xff]  }
 0x1ff   :  { %4925 = vmatpush1.bf16.msra.mxu0 %v6579_v45  ;;  %v6637_v45 = vld [vmem:[#allocation7 + $0x4b4] ss:$12 sps:$4 sm:$0xff]  }
 0x200   :  { %4927 = vmatprep.subr.bf16.mxu0 %v6582_v46  ;;  %v6640_v46 = vld [vmem:[#allocation7 + $0x488] ss:$12 sps:$4 sm:$0xff]  }
 0x201   :  { %5209 = vmatpush3.bf16.msra.mxu1 %v6585_v35  ;;  %v6641_v35 = vld [vmem:[#allocation7 + $0x560] ss:$12 sps:$4 sm:$0xff]  }
 0x202   :  { %5211 = vmatprep.subr.bf16.mxu1 %v6586_v49  ;;  %v6642_v49 = vld [vmem:[#allocation7 + $0x4cc] ss:$12 sps:$4 sm:$0xff]  }
 0x203   :  { %4929 = vmatpush1.bf16.msra.mxu0 %v6584_v5  ;;  %v6645_v5 = vld [vmem:[#allocation7 + $0x4a0] ss:$12 sps:$4 sm:$0xff]  }
 0x204   :  { %4931 = vmatprep.subr.bf16.mxu0 %v6587_v47  ;;  %v6646_v47 = vld [vmem:[#allocation7 + $0x578] ss:$12 sps:$4 sm:$0xff]  }
 0x205   :  { %5213 = vmatpush3.bf16.msra.mxu1 %v6590_v3  ;;  %v6644_v3 = vld [vmem:[#allocation7 + $0x4c8] ss:$12 sps:$4 sm:$0xff]  }
 0x206   :  { %5215 = vmatprep.subr.bf16.mxu1 %v6591_v4  ;;  %v6647_v4 = vld [vmem:[#allocation7 + $0x4e4] ss:$12 sps:$4 sm:$0xff]  }
 0x207   :  { %4933 = vmatpush1.bf16.msra.mxu0 %v6589_v51  ;;  %v6650_v51 = vld [vmem:[#allocation7 + $0x4b8] ss:$12 sps:$4 sm:$0xff]  }
 0x208   :  { %4935 = vmatprep.subr.bf16.mxu0 %v6592_v54  ;;  %v6651_v54 = vld [vmem:[#allocation7 + $0x590] ss:$12 sps:$4 sm:$0xff]  }
 0x209   :  { %5217 = vmatpush3.bf16.msra.mxu1 %v6595_v17  ;;  %v6649_v17 = vld [vmem:[#allocation7 + $0x4e0] ss:$12 sps:$4 sm:$0xff]  }
 0x20a   :  { %5219 = vmatprep.subr.bf16.mxu1 %v6596_v56  ;;  %v6652_v56 = vld [vmem:[#allocation7 + $0x4fc] ss:$12 sps:$4 sm:$0xff]  }
 0x20b   :  { %4937 = vmatpush1.bf16.msra.mxu0 %v6594_v59  ;;  %v6655_v59 = vld [vmem:[#allocation7 + $0x4d0] ss:$12 sps:$4 sm:$0xff]  }
 0x20c   :  { %3538 = vmatmul.mubr.f32.vlgmr.msra.gmra.mrb[20].mxu1 %v2898_v10  ;;  %4939 = vmatprep.subr.bf16.mxu0 %v6597_v63  ;;  %v6611_v10 = vld [vmem:[#allocation7 + $0x410] ss:$12 sps:$4 sm:$0xff]   ;;  %v6656_v63 = vld [vmem:[#allocation7 + $0x5a8] ss:$12 sps:$4 sm:$0xff]  }
 0x20d   :  { %3542 = vmatprep.mubr.f32.mxu1 %v2911_v21  ;;  %5221 = vmatpush3.bf16.msra.mxu1 %v6600_v1  ;;  %v6615_v21 = vld [vmem:[#allocation7 + $0x350] ss:$12 sps:$4 sm:$0xff]   ;;  %v6654_v1 = vld [vmem:[#allocation7 + $0x4f8] ss:$12 sps:$4 sm:$0xff]  }
 0x20e   :  { %5223 = vmatprep.subr.bf16.mxu1 %v6601_v2  ;;  %v6657_v2 = vld [vmem:[#allocation7 + $0x514] ss:$12 sps:$4 sm:$0xff]  }
 0x20f   :  { %4941 = vmatpush1.bf16.msra.mxu0 %v6599_v6  ;;  %v6660_v6 = vld [vmem:[#allocation7 + $0x4e8] ss:$12 sps:$4 sm:$0xff]  }
 0x210   :  { %3543 = vmatmul.mubr.f32.gmra.mrb[22].mxu1 %v2910_v15  ;;  %4943 = vmatprep.subr.bf16.mxu0 %v6602_v7  ;;  %v1930_v15 = vsub.s32 4, %v7110_v48  ;;  %v1942_v7 = vsub.s32 7, %v7110_v48 }
 0x211   :  { %5225 = vmatpush3.bf16.msra.mxu1 %v6605_v8  ;;  %3612 = vmatprep.mubr.f32.mxu1 %v2901_v37  ;;  %v6621_v37 = vld [vmem:[#allocation7 + $0x440] ss:$12 sps:$4 sm:$0xff]  }
 0x212   :  { %5227 = vmatprep.subr.bf16.mxu1 %v6606_v60  ;;  %v1931_v25 = vrot.slane %v7219_v20, %v1930_v15  ;;  %v6661_v8 = vld [vmem:[#allocation7 + $0x5c0] ss:$12 sps:$4 sm:$0xff]   ;;  %v6659_v60 = vld [vmem:[#allocation7 + $0x510] ss:$12 sps:$4 sm:$0xff]  }
 0x213   :  { %4945 = vmatpush1.bf16.msra.mxu0 %v6604_v19  ;;  %v6662_v19 = vld [vmem:[#allocation7 + $0x52c] ss:$12 sps:$4 sm:$0xff]  }
 0x214   :  { %4947 = vmatprep.subr.bf16.mxu0 %v6607_v13  ;;  %v5354_v31 = vadd.f32 %v7144_v34, %v1931_v25  ;;  %v5356_v16 = vadd.f32 %v7148_v41, %v1931_v25  ;;  %v6636_v34 = vld [vmem:[#allocation7 + $0x548] ss:$12 sps:$4 sm:$0xff]   ;;  %v6639_v41 = vld [vmem:[#allocation7 + $0x4b0] ss:$12 sps:$4 sm:$0xff]   ;;  %v1943_v13 = vrot.slane %v7219_v20, %v1942_v7  ;;  %v6669_v25 = vld [vmem:[#allocation7 + $0x540] ss:$12 sps:$4 sm:$0xff]  }
 0x215   :  { %5229 = vmatpush3.bf16.msra.mxu1 %v6610_v57  ;;  %v6665_v57 = vld [vmem:[#allocation7 + $0x500] ss:$12 sps:$4 sm:$0xff]   ;;  %v6706_v7 = vld [vmem:[#allocation7 + $0x758] ss:$12 sps:$4 sm:$0xff]  }
 0x216   :  { %5231 = vmatprep.subr.bf16.mxu1 %v6611_v10  ;;  %v2900_v58 = vmax.f32 %v5354_v31, 0.0  ;;  %v2912_v61 = vmax.f32 %v5356_v16, 0.0  ;;  %v1938_v10 = vsub.s32 6, %v7110_v48  ;;  %v6675_v31 = vld [vmem:[#allocation7 + $0x530] ss:$12 sps:$4 sm:$0xff]  }
 0x217   :  { %4949 = vmatpush1.bf16.msra.mxu0 %v6609_v53  ;;  %v6666_v53 = vld [vmem:[#allocation7 + $0x5d8] ss:$12 sps:$4 sm:$0xff]  }
 0x218   :  { %4951 = vmatprep.subr.bf16.mxu0 %v6612_v18 }
 0x219   :  { %5233 = vmatpush3.bf16.msra.mxu1 %v6615_v21  ;;  %v6664_v21 = vld [vmem:[#allocation7 + $0x528] ss:$12 sps:$4 sm:$0xff]  }
 0x21a   :  { %5235 = vmatprep.subr.bf16.mxu1 %v6616_v22 }
 0x21b   :  { %4953 = vmatpush1.bf16.msra.mxu0 %v6614_v11  ;;  %v6667_v11 = vld [vmem:[#allocation7 + $0x544] ss:$12 sps:$4 sm:$0xff]  }
 0x21c   :  { %4955 = vmatprep.subr.bf16.mxu0 %v6617_v23  ;;  %v6670_v23 = vld [vmem:[#allocation7 + $0x518] ss:$12 sps:$4 sm:$0xff]  }
 0x21d   :  { %5237 = vmatpush3.bf16.msra.mxu1 %v6620_v14  ;;  %v1939_v14 = vrot.slane %v7219_v20, %v1938_v10  ;;  %v6676_v20 = vld [vmem:[#allocation7 + $0x6c8] ss:$12 sps:$4 sm:$0xff]   ;;  %v6709_v10 = vld [vmem:[#allocation7 + $0x600] ss:$12 sps:$4 sm:$0xff]  }
 0x21e   :  { %5239 = vmatprep.subr.bf16.mxu1 %v6621_v37  ;;  %v6671_v37 = vld [vmem:[#allocation7 + $0x5f0] ss:$12 sps:$4 sm:$0xff]  }
 0x21f   :  { %4957 = vmatpush1.bf16.msra.mxu0 %v6619_v24 }
 0x220   :  { %4959 = vmatprep.subr.bf16.mxu0 %v6622_v26 }
 0x221   :  { %5241 = vmatpush3.bf16.msra.mxu1 %v6625_v27  ;;  %v7230_v27 = vld [vmem:[#allocation8 + $0x20] ss:$4 sm:$0xf] }
 0x222   :  { %5243 = vmatprep.subr.bf16.mxu1 %v6626_v28  ;;  %v6672_v28 = vld [vmem:[#allocation7 + $0x55c] ss:$12 sps:$4 sm:$0xff]  }
 0x223   :  { %4961 = vmatpush1.bf16.msra.mxu0 %v6624_v29 }
 0x224   :  { %4963 = vmatprep.subr.bf16.mxu0 %v6627_v62 }
 0x225   :  { %5245 = vmatpush3.bf16.msra.mxu1 %v6630_v32  ;;  %v7238_v32 = vrot.slane %v7230_v27, %v7118_v55 }
 0x226   :  { %3155 = vmatmul.mubr.f32.vlgmr.msra.gmra.mrb[8].mxu0 %v2900_v58  ;;  %5247 = vmatprep.subr.bf16.mxu1 %v6631_v0  ;;  %v6674_v0 = vld [vmem:[#allocation7 + $0x558] ss:$12 sps:$4 sm:$0xff]  }
 0x227   :  { %3160 = vmatprep.mubr.f32.mxu0 %v2913_v40  ;;  %4965 = vmatpush1.bf16.msra.mxu0 %v6629_v33 }
 0x228   :  { %4967 = vmatprep.subr.bf16.mxu0 %v6632_v38  ;;  %v6680_v38 = vld [vmem:[#allocation7 + $0x608] ss:$12 sps:$4 sm:$0xff]  }
 0x229   :  { %5249 = vmatpush3.bf16.msra.mxu1 %v6635_v44  ;;  %v6681_v44 = vld [vmem:[#allocation7 + $0x6e0] ss:$12 sps:$4 sm:$0xff]  }
 0x22a   :  { %3161 = vmatmul.mubr.f32.gmra.mrb[10].mxu0 %v2912_v61  ;;  %5251 = vmatprep.subr.bf16.mxu1 %v6636_v34  ;;  %v7246_v34 = vadd.f32 %v7204_v36, %v7238_v32  ;;  %v6684_v36 = vld [vmem:[#allocation7 + $0x588] ss:$12 sps:$4 sm:$0xff]  }
 0x22b   :  { %4969 = vmatpush1.bf16.msra.mxu0 %v6634_v43  ;;  %v6679_v43 = vld [vmem:[#allocation7 + $0x570] ss:$12 sps:$4 sm:$0xff]  }
 0x22c   :  { %3613 = vmatmul.mubr.f32.vlgmr.msra.gmra.mrb[24].mxu1 %v2900_v58  ;;  %4971 = vmatprep.subr.bf16.mxu0 %v6637_v45  ;;  %v6677_v58 = vld [vmem:[#allocation7 + $0x574] ss:$12 sps:$4 sm:$0xff]   ;;  %v6682_v45 = vld [vmem:[#allocation7 + $0x58c] ss:$12 sps:$4 sm:$0xff]  }
 0x22d   :  { %3617 = vmatprep.mubr.f32.mxu1 %v2913_v40  ;;  %5253 = vmatpush3.bf16.msra.mxu1 %v6640_v46  ;;  %v6685_v46 = vld [vmem:[#allocation7 + $0x620] ss:$12 sps:$4 sm:$0xff]  }
 0x22e   :  { %5255 = vmatprep.subr.bf16.mxu1 %v6641_v35  ;;  %v6686_v35 = vld [vmem:[#allocation7 + $0x6f8] ss:$12 sps:$4 sm:$0xff]  }
 0x22f   :  { %4973 = vmatpush1.bf16.msra.mxu0 %v6639_v41  ;;  %v2905_v41 = vmax.f32 %v7246_v34, 0.0  ;;  %v6730_v34 = vld [vmem:[#allocation7 + $0x690] ss:$12 sps:$4 sm:$0xff]  }
 0x230   :  { %3618 = vmatmul.mubr.f32.gmra.mrb[26].mxu1 %v2912_v61  ;;  %4975 = vmatprep.subr.bf16.mxu0 %v6642_v49  ;;  %v6687_v49 = vld [vmem:[#allocation7 + $0x5a4] ss:$12 sps:$4 sm:$0xff]  }
 0x231   :  { %5257 = vmatpush3.bf16.msra.mxu1 %v6645_v5  ;;  %v6690_v5 = vld [vmem:[#allocation7 + $0x638] ss:$12 sps:$4 sm:$0xff]  }
 0x232   :  { %5259 = vmatprep.subr.bf16.mxu1 %v6646_v47  ;;  %v6691_v47 = vld [vmem:[#allocation7 + $0x710] ss:$12 sps:$4 sm:$0xff]  }
 0x233   :  { %4977 = vmatpush1.bf16.msra.mxu0 %v6644_v3  ;;  %v6689_v3 = vld [vmem:[#allocation7 + $0x5a0] ss:$12 sps:$4 sm:$0xff]  }
 0x234   :  { %4979 = vmatprep.subr.bf16.mxu0 %v6647_v4  ;;  %v6692_v4 = vld [vmem:[#allocation7 + $0x5bc] ss:$12 sps:$4 sm:$0xff]  }
 0x235   :  { %5261 = vmatpush3.bf16.msra.mxu1 %v6650_v51  ;;  %v6695_v51 = vld [vmem:[#allocation7 + $0x650] ss:$12 sps:$4 sm:$0xff]  }
 0x236   :  { %5263 = vmatprep.subr.bf16.mxu1 %v6651_v54  ;;  %v6696_v54 = vld [vmem:[#allocation7 + $0x728] ss:$12 sps:$4 sm:$0xff]  }
 0x237   :  { %4981 = vmatpush1.bf16.msra.mxu0 %v6649_v17  ;;  %v6694_v17 = vld [vmem:[#allocation7 + $0x5b8] ss:$12 sps:$4 sm:$0xff]  }
 0x238   :  { %4983 = vmatprep.subr.bf16.mxu0 %v6652_v56  ;;  %v6697_v56 = vld [vmem:[#allocation7 + $0x5d4] ss:$12 sps:$4 sm:$0xff]  }
 0x239   :  { %5265 = vmatpush3.bf16.msra.mxu1 %v6655_v59  ;;  %v6700_v59 = vld [vmem:[#allocation7 + $0x668] ss:$12 sps:$4 sm:$0xff]  }
 0x23a   :  { %5267 = vmatprep.subr.bf16.mxu1 %v6656_v63  ;;  %v6701_v63 = vld [vmem:[#allocation7 + $0x740] ss:$12 sps:$4 sm:$0xff]  }
 0x23b   :  { %4985 = vmatpush1.bf16.msra.mxu0 %v6654_v1  ;;  %v6699_v1 = vld [vmem:[#allocation7 + $0x5d0] ss:$12 sps:$4 sm:$0xff]  }
 0x23c   :  { %4987 = vmatprep.subr.bf16.mxu0 %v6657_v2  ;;  %v6702_v2 = vld [vmem:[#allocation7 + $0x5ec] ss:$12 sps:$4 sm:$0xff]  }
 0x23d   :  { %5269 = vmatpush3.bf16.msra.mxu1 %v6660_v6  ;;  %v6705_v6 = vld [vmem:[#allocation7 + $0x680] ss:$12 sps:$4 sm:$0xff]  }
 0x23e   :  { %5271 = vmatprep.subr.bf16.mxu1 %v6661_v8  ;;  %v6704_v8 = vld [vmem:[#allocation7 + $0x5e8] ss:$12 sps:$4 sm:$0xff]  }
 0x23f   :  { %4989 = vmatpush1.bf16.msra.mxu0 %v6659_v60  ;;  %v2577_v18 = vpop.f32.mrb[8].mxu1  ;;  %v6707_v60 = vld [vmem:[#allocation7 + $0x604] ss:$12 sps:$4 sm:$0xff]  }
 0x240   :  { %v2579_v22 = vpop.f32.mrb[9].mxu1  ;;  %4991 = vmatprep.subr.bf16.mxu0 %v6662_v19  ;;  %v7234_v9 = vadd.f32 %v2577_v18, %v1939_v14  ;;  %v6710_v19 = vld [vmem:[#allocation7 + $0x698] ss:$12 sps:$4 sm:$0xff]   ;;  %v6715_v18 = vld [vmem:[#allocation7 + $0x6b0] ss:$12 sps:$4 sm:$0xff]  }
 0x241   :  { %v5359_v15 = vadd.f32 %v2579_v22, %v1943_v13  ;;  %5273 = vmatpush3.bf16.msra.mxu1 %v6665_v57  ;;  %v6711_v57 = vld [vmem:[#allocation7 + $0x770] ss:$12 sps:$4 sm:$0xff]   ;;  %v6737_v22 = vld [vmem:[#allocation7 + $0x848] ss:$12 sps:$4 sm:$0xff]  }
 0x242   :  { %5275 = vmatprep.subr.bf16.mxu1 %v6666_v53  ;;  %v2902_v40 = vmax.f32 %v7234_v9, 0.0  ;;  %v6712_v53 = vld [vmem:[#allocation7 + $0x61c] ss:$12 sps:$4 sm:$0xff]   ;;  %v6748_v9 = vld [vmem:[#allocation7 + $0x7b8] ss:$12 sps:$4 sm:$0xff]  }
 0x243   :  { %v2903_v24 = vmax.f32 %v5359_v15, 0.0  ;;  %4993 = vmatpush1.bf16.msra.mxu0 %v6664_v21  ;;  %v2583_v26 = vpop.f32.mrb[10].mxu1  ;;  %v6714_v15 = vld [vmem:[#allocation7 + $0x618] ss:$12 sps:$4 sm:$0xff]  }
 0x244   :  { %4995 = vmatprep.subr.bf16.mxu0 %v6667_v11  ;;  %v2585_v29 = vpop.f32.mrb[11].mxu1  ;;  %v7240_v33 = vadd.f32 %v2583_v26, %v1939_v14  ;;  %v7267_v11 = vadd.f32 %v7208_v42, %v7238_v32  ;;  %v6738_v14 = vld [vmem:[#allocation7 + $0x788] ss:$12 sps:$4 sm:$0xff]   ;;  %v6742_v42 = vld [vmem:[#allocation7 + $0x860] ss:$12 sps:$4 sm:$0xff]  }
 0x245   :  { %3231 = vmatprep.mubr.f32.mxu0 %v2903_v24  ;;  %5277 = vmatpush3.bf16.msra.mxu1 %v6670_v23  ;;  %v7232_v62 = vadd.f32 %v2585_v29, %v1943_v13  ;;  %v1947_v13 = vrot.slane %v7230_v27, %v7113_v52  ;;  %v6716_v23 = vld [vmem:[#allocation7 + $0x634] ss:$12 sps:$4 sm:$0xff]   ;;  %v6719_v26 = vld [vmem:[#allocation7 + $0x64c] ss:$12 sps:$4 sm:$0xff]  }
 0x246   :  { %3687 = vmatprep.mubr.f32.mxu1 %v2903_v24  ;;  %5279 = vmatprep.subr.bf16.mxu1 %v6671_v37  ;;  %v2914_v61 = vmax.f32 %v7240_v33, 0.0  ;;  %v2917_v24 = vmax.f32 %v7267_v11, 0.0  ;;  %v6747_v29 = vld [vmem:[#allocation7 + $0x878] ss:$12 sps:$4 sm:$0xff]   ;;  %v6724_v32 = vld [vmem:[#allocation7 + $0x660] ss:$12 sps:$4 sm:$0xff]  }
 0x247   :  { %4997 = vmatpush1.bf16.msra.mxu0 %v6669_v25  ;;  %v2915_v16 = vmax.f32 %v7232_v62, 0.0  ;;  %v7261_v21 = vadd.f32 %v7202_v12, %v1947_v13  ;;  %v7273_v37 = vadd.f32 %v7206_v39, %v1947_v13  ;;  %v6718_v25 = vld [vmem:[#allocation7 + $0x630] ss:$12 sps:$4 sm:$0xff]   ;;  %v6743_v39 = vld [vmem:[#allocation7 + $0x7a0] ss:$12 sps:$4 sm:$0xff]  }
 0x248   :  { %4999 = vmatprep.subr.bf16.mxu0 %v6672_v28  ;;  %v6722_v62 = vld [vmem:[#allocation7 + $0x664] ss:$12 sps:$4 sm:$0xff]   ;;  %v6771_v13 = vld [vmem:[#allocation7 + $0x768] ss:$12 sps:$4 sm:$0xff]  }
 0x249   :  { %5281 = vmatpush3.bf16.msra.mxu1 %v6675_v31  ;;  %v2904_v12 = vmax.f32 %v7261_v21, 0.0  ;;  %v2916_v28 = vmax.f32 %v7273_v37, 0.0  ;;  %v6721_v31 = vld [vmem:[#allocation7 + $0x648] ss:$12 sps:$4 sm:$0xff]   ;;  %v6753_v33 = vld [vmem:[#allocation7 + $0x7d0] ss:$12 sps:$4 sm:$0xff]  }
 0x24a   :  { %5283 = vmatprep.subr.bf16.mxu1 %v6676_v20  ;;  %v6752_v20 = vld [vmem:[#allocation7 + $0x890] ss:$12 sps:$4 sm:$0xff]   ;;  %v6785_v11 = vld [vmem:[#allocation7 + $0x7c8] ss:$12 sps:$4 sm:$0xff]  }
 0x24b   :  { %5001 = vmatpush1.bf16.msra.mxu0 %v6674_v0  ;;  %v6725_v0 = vld [vmem:[#allocation7 + $0x67c] ss:$12 sps:$4 sm:$0xff]   ;;  %v6792_v37 = vld [vmem:[#allocation7 + $0x814] ss:$12 sps:$4 sm:$0xff]  }
 0x24c   :  { %3688 = vmatmul.mubr.f32.vlgmr.msra.gmra.mrb[28].mxu1 %v2902_v40  ;;  %5003 = vmatprep.subr.bf16.mxu0 %v6677_v58  ;;  %v6757_v58 = vld [vmem:[#allocation7 + $0x8a8] ss:$12 sps:$4 sm:$0xff]   ;;  %v6782_v21 = vld [vmem:[#allocation7 + $0x7b0] ss:$12 sps:$4 sm:$0xff]  }
 0x24d   :  { %5285 = vmatpush3.bf16.msra.mxu1 %v6680_v38  ;;  %3692 = vmatprep.mubr.f32.mxu1 %v2915_v16  ;;  %v6728_v38 = vld [vmem:[#allocation7 + $0x694] ss:$12 sps:$4 sm:$0xff]  }
 0x24e   :  { %5287 = vmatprep.subr.bf16.mxu1 %v6681_v44  ;;  %v6762_v44 = vld [vmem:[#allocation7 + $0x8c0] ss:$12 sps:$4 sm:$0xff]  }
 0x24f   :  { %5005 = vmatpush1.bf16.msra.mxu0 %v6679_v43  ;;  %v6731_v43 = vld [vmem:[#allocation7 + $0x6ac] ss:$12 sps:$4 sm:$0xff]  }
 0x250   :  { %3693 = vmatmul.mubr.f32.gmra.mrb[30].mxu1 %v2914_v61  ;;  %5007 = vmatprep.subr.bf16.mxu0 %v6682_v45  ;;  %v6767_v45 = vld [vmem:[#allocation7 + $0x8d8] ss:$12 sps:$4 sm:$0xff]  }
 0x251   :  { %5289 = vmatpush3.bf16.msra.mxu1 %v6685_v46  ;;  %3762 = vmatprep.mubr.f32.mxu1 %v2905_v41  ;;  %v6733_v46 = vld [vmem:[#allocation7 + $0x6a8] ss:$12 sps:$4 sm:$0xff]  }
 0x252   :  { %5291 = vmatprep.subr.bf16.mxu1 %v6686_v35  ;;  %v6734_v35 = vld [vmem:[#allocation7 + $0x6c4] ss:$12 sps:$4 sm:$0xff]  }
 0x253   :  { %5009 = vmatpush1.bf16.msra.mxu0 %v6684_v36  ;;  %v6772_v36 = vld [vmem:[#allocation7 + $0x8f0] ss:$12 sps:$4 sm:$0xff]  }
 0x254   :  { %5011 = vmatprep.subr.bf16.mxu0 %v6687_v49  ;;  %v6736_v49 = vld [vmem:[#allocation7 + $0x6c0] ss:$12 sps:$4 sm:$0xff]  }
 0x255   :  { %5293 = vmatpush3.bf16.msra.mxu1 %v6690_v5  ;;  %v6739_v5 = vld [vmem:[#allocation7 + $0x6dc] ss:$12 sps:$4 sm:$0xff]  }
 0x256   :  { %5295 = vmatprep.subr.bf16.mxu1 %v6691_v47  ;;  %v6773_v47 = vld [vmem:[#allocation7 + $0x830] ss:$12 sps:$4 sm:$0xff]  }
 0x257   :  { %5013 = vmatpush1.bf16.msra.mxu0 %v6689_v3  ;;  %v6741_v3 = vld [vmem:[#allocation7 + $0x6d8] ss:$12 sps:$4 sm:$0xff]  }
 0x258   :  { %5015 = vmatprep.subr.bf16.mxu0 %v6692_v4  ;;  %v6744_v4 = vld [vmem:[#allocation7 + $0x6f4] ss:$12 sps:$4 sm:$0xff]  }
 0x259   :  { %5297 = vmatpush3.bf16.msra.mxu1 %v6695_v51  ;;  %v6746_v51 = vld [vmem:[#allocation7 + $0x6f0] ss:$12 sps:$4 sm:$0xff]  }
 0x25a   :  { %5299 = vmatprep.subr.bf16.mxu1 %v6696_v54  ;;  %v6749_v54 = vld [vmem:[#allocation7 + $0x70c] ss:$12 sps:$4 sm:$0xff]  }
 0x25b   :  { %5017 = vmatpush1.bf16.msra.mxu0 %v6694_v17  ;;  %v6751_v17 = vld [vmem:[#allocation7 + $0x708] ss:$12 sps:$4 sm:$0xff]  }
 0x25c   :  { %5019 = vmatprep.subr.bf16.mxu0 %v6697_v56  ;;  %v6754_v56 = vld [vmem:[#allocation7 + $0x724] ss:$12 sps:$4 sm:$0xff]  }
 0x25d   :  { %5301 = vmatpush3.bf16.msra.mxu1 %v6700_v59  ;;  %v6756_v59 = vld [vmem:[#allocation7 + $0x720] ss:$12 sps:$4 sm:$0xff]  }
 0x25e   :  { %5303 = vmatprep.subr.bf16.mxu1 %v6701_v63  ;;  %v6759_v63 = vld [vmem:[#allocation7 + $0x73c] ss:$12 sps:$4 sm:$0xff]  }
 0x25f   :  { %5021 = vmatpush1.bf16.msra.mxu0 %v6699_v1  ;;  %v6761_v1 = vld [vmem:[#allocation7 + $0x738] ss:$12 sps:$4 sm:$0xff]  }
 0x260   :  { %5023 = vmatprep.subr.bf16.mxu0 %v6702_v2  ;;  %v6764_v2 = vld [vmem:[#allocation7 + $0x754] ss:$12 sps:$4 sm:$0xff]  }
 0x261   :  { %5305 = vmatpush3.bf16.msra.mxu1 %v6705_v6  ;;  %v6766_v6 = vld [vmem:[#allocation7 + $0x750] ss:$12 sps:$4 sm:$0xff]  }
 0x262   :  { %5307 = vmatprep.subr.bf16.mxu1 %v6706_v7  ;;  %v1955_v7 = vrot.slane %v7230_v27, %v7162_v30 }
 0x263   :  { %5025 = vmatpush1.bf16.msra.mxu0 %v6704_v8  ;;  %v6769_v8 = vld [vmem:[#allocation7 + $0x76c] ss:$12 sps:$4 sm:$0xff]  }
 0x264   :  { %5027 = vmatprep.subr.bf16.mxu0 %v6707_v60  ;;  %v1959_v60 = vrot.slane %v7230_v27, %v1926_v50  ;;  %v6777_v50 = vld [vmem:[#allocation7 + $0x79c] ss:$12 sps:$4 sm:$0xff]  }
 0x265   :  { %5309 = vmatpush3.bf16.msra.mxu1 %v6710_v19 }
 0x266   :  { %3232 = vmatmul.mubr.f32.vlgmr.msra.gmra.mrb[8].mxu0 %v2902_v40  ;;  %5311 = vmatprep.subr.bf16.mxu1 %v6711_v57  ;;  %v6758_v40 = vld [vmem:[#allocation7 + $0x7e8] ss:$12 sps:$4 sm:$0xff]  }
 0x267   :  { %3237 = vmatprep.mubr.f32.mxu0 %v2915_v16  ;;  %5029 = vmatpush1.bf16.msra.mxu0 %v6709_v10  ;;  %v6727_v16 = vld [vmem:[#allocation7 + $0x678] ss:$12 sps:$4 sm:$0xff]  }
 0x268   :  { %5031 = vmatprep.subr.bf16.mxu0 %v6712_v53  ;;  %v6774_v53 = vld [vmem:[#allocation7 + $0x784] ss:$12 sps:$4 sm:$0xff]  }
 0x269   :  { %5313 = vmatpush3.bf16.msra.mxu1 %v6715_v18 }
 0x26a   :  { %3238 = vmatmul.mubr.f32.gmra.mrb[10].mxu0 %v2914_v61  ;;  %5315 = vmatprep.subr.bf16.mxu1 %v6737_v22  ;;  %v6763_v61 = vld [vmem:[#allocation7 + $0x800] ss:$12 sps:$4 sm:$0xff]  }
 0x26b   :  { %5033 = vmatpush1.bf16.msra.mxu0 %v6714_v15  ;;  %3308 = vmatprep.mubr.f32.mxu0 %v2905_v41  ;;  %v6768_v41 = vld [vmem:[#allocation7 + $0x818] ss:$12 sps:$4 sm:$0xff]  }
 0x26c   :  { %3763 = vmatmul.mubr.f32.vlgmr.msra.gmra.mrb[32].mxu1 %v2904_v12  ;;  %5035 = vmatprep.subr.bf16.mxu0 %v6716_v23 }
 0x26d   :  { %3767 = vmatprep.mubr.f32.mxu1 %v2917_v24  ;;  %5317 = vmatpush3.bf16.msra.mxu1 %v6738_v14  ;;  %v6776_v14 = vld [vmem:[#allocation7 + $0x780] ss:$12 sps:$4 sm:$0xff]  }
 0x26e   :  { %5319 = vmatprep.subr.bf16.mxu1 %v6742_v42 }
 0x26f   :  { %5037 = vmatpush1.bf16.msra.mxu0 %v6718_v25 }
 0x270   :  { %3768 = vmatmul.mubr.f32.gmra.mrb[34].mxu1 %v2916_v28  ;;  %5039 = vmatprep.subr.bf16.mxu0 %v6719_v26 }
 0x271   :  { %5321 = vmatpush3.bf16.msra.mxu1 %v6743_v39  ;;  %v6779_v39 = vld [vmem:[#allocation7 + $0x798] ss:$12 sps:$4 sm:$0xff]  }
 0x272   :  { %5323 = vmatprep.subr.bf16.mxu1 %v6747_v29  ;;  %v6780_v29 = vld [vmem:[#allocation7 + $0x7b4] ss:$12 sps:$4 sm:$0xff]  }
 0x273   :  { %5041 = vmatpush1.bf16.msra.mxu0 %v6721_v31  ;;  %v6788_v31 = vld [vmem:[#allocation7 + $0x7e0] ss:$12 sps:$4 sm:$0xff]  }
 0x274   :  { %5043 = vmatprep.subr.bf16.mxu0 %v6722_v62  ;;  %v6789_v62 = vld [vmem:[#allocation7 + $0x7fc] ss:$12 sps:$4 sm:$0xff]  }
 0x275   :  { %5325 = vmatpush3.bf16.msra.mxu1 %v6748_v9  ;;  %v6791_v9 = vld [vmem:[#allocation7 + $0x7f8] ss:$12 sps:$4 sm:$0xff]  }
 0x276   :  { %5327 = vmatprep.subr.bf16.mxu1 %v6752_v20  ;;  %v6795_v20 = vld [vmem:[#allocation7 + $0x82c] ss:$12 sps:$4 sm:$0xff]  }
 0x277   :  { %5045 = vmatpush1.bf16.msra.mxu0 %v6724_v32 }
 0x278   :  { %5047 = vmatprep.subr.bf16.mxu0 %v6725_v0  ;;  %v6797_v0 = vld [vmem:[#allocation7 + $0x828] ss:$12 sps:$4 sm:$0xff]  }
 0x279   :  { %5329 = vmatpush3.bf16.msra.mxu1 %v6753_v33 }
 0x27a   :  { %5331 = vmatprep.subr.bf16.mxu1 %v6757_v58  ;;  %v6798_v58 = vld [vmem:[#allocation7 + $0x844] ss:$12 sps:$4 sm:$0xff]  }
 0x27b   :  { %5049 = vmatpush1.bf16.msra.mxu0 %v6727_v16 }
 0x27c   :  { %5051 = vmatprep.subr.bf16.mxu0 %v6728_v38 }
 0x27d   :  { %5333 = vmatpush3.bf16.msra.mxu1 %v6758_v40  ;;  %v6800_v40 = vld [vmem:[#allocation7 + $0x840] ss:$12 sps:$4 sm:$0xff]  }
 0x27e   :  { %5335 = vmatprep.subr.bf16.mxu1 %v6762_v44 }
 0x27f   :  { %5053 = vmatpush1.bf16.msra.mxu0 %v6730_v34  ;;  %v6801_v34 = vld [vmem:[#allocation7 + $0x85c] ss:$12 sps:$4 sm:$0xff]  }
 0x280   :  { %5055 = vmatprep.subr.bf16.mxu0 %v6731_v43 }
 0x281   :  { %5337 = vmatpush3.bf16.msra.mxu1 %v6763_v61  ;;  %v6803_v61 = vld [vmem:[#allocation7 + $0x858] ss:$12 sps:$4 sm:$0xff]  }
 0x282   :  { %5339 = vmatprep.subr.bf16.mxu1 %v6767_v45  ;;  %v6804_v45 = vld [vmem:[#allocation7 + $0x874] ss:$12 sps:$4 sm:$0xff]  }
 0x283   :  { %5057 = vmatpush1.bf16.msra.mxu0 %v6733_v46  ;;  %v6806_v46 = vld [vmem:[#allocation7 + $0x870] ss:$12 sps:$4 sm:$0xff]  }
 0x284   :  { %5059 = vmatprep.subr.bf16.mxu0 %v6734_v35  ;;  %v6807_v35 = vld [vmem:[#allocation7 + $0x88c] ss:$12 sps:$4 sm:$0xff]  }
 0x285   :  { %5341 = vmatpush3.bf16.msra.mxu1 %v6768_v41  ;;  %v6809_v41 = vld [vmem:[#allocation7 + $0x888] ss:$12 sps:$4 sm:$0xff]  }
 0x286   :  { %5343 = vmatprep.subr.bf16.mxu1 %v6772_v36  ;;  %v6810_v36 = vld [vmem:[#allocation7 + $0x8a4] ss:$12 sps:$4 sm:$0xff]  }
 0x287   :  { %5061 = vmatpush1.bf16.msra.mxu0 %v6736_v49  ;;  %v6812_v49 = vld [vmem:[#allocation7 + $0x8a0] ss:$12 sps:$4 sm:$0xff]  }
 0x288   :  { %5063 = vmatprep.subr.bf16.mxu0 %v6739_v5  ;;  %v6813_v5 = vld [vmem:[#allocation7 + $0x8bc] ss:$12 sps:$4 sm:$0xff]  }
 0x289   :  { %5345 = vmatpush3.bf16.msra.mxu1 %v6773_v47  ;;  %v6815_v47 = vld [vmem:[#allocation7 + $0x8b8] ss:$12 sps:$4 sm:$0xff]  }
 0x28b   :  { %5065 = vmatpush1.bf16.msra.mxu0 %v6741_v3  ;;  %v6816_v3 = vld [vmem:[#allocation7 + $0x8d4] ss:$12 sps:$4 sm:$0xff]  }
 0x28c   :  { %5067 = vmatprep.subr.bf16.mxu0 %v6744_v4  ;;  %v81_v4 = vld [vmem:[#allocation8 + $0x1] ss:$4 sm:$0x7] }
 0x28f   :  { %5069 = vmatpush1.bf16.msra.mxu0 %v6746_v51  ;;  %v6818_v51 = vld [vmem:[#allocation7 + $0x8d0] ss:$12 sps:$4 sm:$0xff]  }
 0x290   :  { %5071 = vmatprep.subr.bf16.mxu0 %v6749_v54  ;;  %v6819_v54 = vld [vmem:[#allocation7 + $0x8ec] ss:$12 sps:$4 sm:$0xff]  }
 0x293   :  { %5073 = vmatpush1.bf16.msra.mxu0 %v6751_v17  ;;  %v2932_v17 = vrot.slane %v81_v4, %v7162_v30 }
 0x294   :  { %5075 = vmatprep.subr.bf16.mxu0 %v6754_v56 }
 0x297   :  { %5077 = vmatpush1.bf16.msra.mxu0 %v6756_v59  ;;  %v6821_v59 = vld [vmem:[#allocation7 + $0x8e8] ss:$12 sps:$4 sm:$0xff]  }
 0x298   :  { %5079 = vmatprep.subr.bf16.mxu0 %v6759_v63 }
 0x29b   :  { %5081 = vmatpush1.bf16.msra.mxu0 %v6761_v1 }
 0x29c   :  { %5083 = vmatprep.subr.bf16.mxu0 %v6764_v2 }
 0x29f   :  { %5085 = vmatpush1.bf16.msra.mxu0 %v6766_v6  ;;  %v2885_v19 = vpop.f32.mrb[12].mxu1 }
 0x2a0   :  { %v7292_v57 = vadd.f32 %v2885_v19, %v1955_v7  ;;  %v2887_v10 = vpop.f32.mrb[13].mxu1  ;;  %5087 = vmatprep.subr.bf16.mxu0 %v6769_v8 }
 0x2a1   :  { %v5367_v18 = vadd.f32 %v2887_v10, %v1959_v60 }
 0x2a2   :  { %v2906_v22 = vmax.f32 %v7292_v57, 0.0 }
 0x2a3   :  { %v2907_v15 = vmax.f32 %v5367_v18, 0.0  ;;  %5089 = vmatpush1.bf16.msra.mxu0 %v6771_v13  ;;  %v2891_v23 = vpop.f32.mrb[14].mxu1 }
 0x2a4   :  { %v7295_v42 = vadd.f32 %v2891_v23, %v1955_v7  ;;  %v2893_v48 = vpop.f32.mrb[15].mxu1  ;;  %5091 = vmatprep.subr.bf16.mxu0 %v6774_v53 }
 0x2a5   :  { %v7297_v27 = vadd.f32 %v2893_v48, %v1959_v60  ;;  %3837 = vmatprep.mubr.f32.mxu1 %v2907_v15 }
 0x2a6   :  { %v2918_v25 = vmax.f32 %v7295_v42, 0.0  ;;  %3309 = vmatmul.mubr.f32.vlgmr.msra.gmra.mrb[8].mxu0 %v2904_v12  ;;  %3838 = vmatmul.mubr.f32.vlgmr.msra.gmra.mrb[36].mxu1 %v2906_v22  ;;  %v6783_v12 = vld [vmem:[#allocation7 + $0x7cc] ss:$12 sps:$4 sm:$0xff]  }
 0x2a7   :  { %v2919_v26 = vmax.f32 %v7297_v27, 0.0  ;;  %3314 = vmatprep.mubr.f32.mxu0 %v2917_v24  ;;  %5093 = vmatpush1.bf16.msra.mxu0 %v6776_v14  ;;  %v6786_v24 = vld [vmem:[#allocation7 + $0x7e4] ss:$12 sps:$4 sm:$0xff]  }
 0x2a8   :  { %5095 = vmatprep.subr.bf16.mxu0 %v6777_v50 }
 0x2a9   :  { %3842 = vmatprep.mubr.f32.mxu1 %v2919_v26 }
 0x2aa   :  { %3315 = vmatmul.mubr.f32.gmra.mrb[10].mxu0 %v2916_v28  ;;  %3843 = vmatmul.mubr.f32.gmra.mrb[38].mxu1 %v2918_v25  ;;  %v6794_v28 = vld [vmem:[#allocation7 + $0x810] ss:$12 sps:$4 sm:$0xff]  }
 0x2ab   :  { %5097 = vmatpush1.bf16.msra.mxu0 %v6779_v39  ;;  %3385 = vmatprep.mubr.f32.mxu0 %v2907_v15 }
 0x2ac   :  { %5099 = vmatprep.subr.bf16.mxu0 %v6780_v29 }
 0x2af   :  { %5101 = vmatpush1.bf16.msra.mxu0 %v6782_v21 }
 0x2b0   :  { %5103 = vmatprep.subr.bf16.mxu0 %v6783_v12 }
 0x2b3   :  { %5105 = vmatpush1.bf16.msra.mxu0 %v6785_v11 }
 0x2b4   :  { %5107 = vmatprep.subr.bf16.mxu0 %v6786_v24 }
 0x2b7   :  { %5109 = vmatpush1.bf16.msra.mxu0 %v6788_v31 }
 0x2b8   :  { %5111 = vmatprep.subr.bf16.mxu0 %v6789_v62 }
 0x2bb   :  { %5113 = vmatpush1.bf16.msra.mxu0 %v6791_v9 }
 0x2bc   :  { %5115 = vmatprep.subr.bf16.mxu0 %v6792_v37 }
 0x2bf   :  { %5117 = vmatpush1.bf16.msra.mxu0 %v6794_v28  ;;  %v3998_v32 = vpop.f32.mrb[16].mxu1 }
 0x2c0   :  { %v3999_v33 = vpop.f32.mrb[17].mxu1  ;;  %5119 = vmatprep.subr.bf16.mxu0 %v6795_v20 }
 0x2c1   :  { %v4000_v16 = vadd.f32 %v3999_v33, %v3998_v32 }
 0x2c3   :  { %5121 = vmatpush1.bf16.msra.mxu0 %v6797_v0  ;;  %v4001_v38 = vpop.f32.mrb[18].mxu1  ;;  %v3465_v1 = vadd.f32 %v4000_v16, %v2932_v17 }
 0x2c4   :  { %v4002_v44 = vpop.f32.mrb[19].mxu1  ;;  %5123 = vmatprep.subr.bf16.mxu0 %v6798_v58 }
 0x2c5   :  { %v4003_v43 = vadd.f32 %v4002_v44, %v4001_v38  ;;  %v2928_v44 = vrot.slane %v81_v4, %v7118_v55 }
 0x2c7   :  { %5125 = vmatpush1.bf16.msra.mxu0 %v6800_v40  ;;  %v3470_v60 = vadd.f32 %v4003_v43, %v2932_v17  ;;  %v2924_v40 = vrot.slane %v81_v4, %v7113_v52 }
 0x2c8   :  { %5127 = vmatprep.subr.bf16.mxu0 %v6801_v34 }
 0x2cb   :  { %5129 = vmatpush1.bf16.msra.mxu0 %v6803_v61 }
 0x2cc   :  { %5131 = vmatprep.subr.bf16.mxu0 %v6804_v45 }
 0x2cf   :  { %5133 = vmatpush1.bf16.msra.mxu0 %v6806_v46 }
 0x2d0   :  { %5135 = vmatprep.subr.bf16.mxu0 %v6807_v35 }
 0x2d3   :  { %5137 = vmatpush1.bf16.msra.mxu0 %v6809_v41 }
 0x2d4   :  { %5139 = vmatprep.subr.bf16.mxu0 %v6810_v36 }
 0x2d7   :  { %5141 = vmatpush1.bf16.msra.mxu0 %v6812_v49 }
 0x2d8   :  { %5143 = vmatprep.subr.bf16.mxu0 %v6813_v5 }
 0x2db   :  { %5145 = vmatpush1.bf16.msra.mxu0 %v6815_v47 }
 0x2dc   :  { %5147 = vmatprep.subr.bf16.mxu0 %v6816_v3 }
 0x2df   :  { %5149 = vmatpush1.bf16.msra.mxu0 %v6818_v51  ;;  %v4036_v56 = vpop.f32.mrb[20].mxu1 }
 0x2e0   :  { %v4037_v63 = vpop.f32.mrb[21].mxu1  ;;  %5151 = vmatprep.subr.bf16.mxu0 %v6819_v54 }
 0x2e1   :  { %v4038_v2 = vadd.f32 %v4037_v63, %v4036_v56 }
 0x2e3   :  { %v3540_v6 = vadd.f32 %v4038_v2, %v3465_v1  ;;  %5153 = vmatpush1.bf16.msra.mxu0 %v6821_v59  ;;  %v4039_v7 = vpop.f32.mrb[22].mxu1 }
 0x2e4   :  { %v4040_v8 = vpop.f32.mrb[23].mxu1 }
 0x2e5   :  { %v4041_v19 = vadd.f32 %v4040_v8, %v4039_v7 }
 0x2e6   :  { %3386 = vmatmul.mubr.f32.vlgmr.msra.gmra.mrb[8].mxu0 %v2906_v22 }
 0x2e7   :  { %v3545_v13 = vadd.f32 %v4041_v19, %v3470_v60  ;;  %3391 = vmatprep.mubr.f32.mxu0 %v2919_v26 }
 0x2ea   :  { %3392 = vmatmul.mubr.f32.gmra.mrb[10].mxu0 %v2918_v25 }
 0x2ff   :  { %v4074_v10 = vpop.f32.mrb[24].mxu1 }
 0x300   :  { %v4075_v53 = vpop.f32.mrb[25].mxu1 }
 0x301   :  { %v4076_v18 = vadd.f32 %v4075_v53, %v4074_v10 }
 0x303   :  { %v3615_v15 = vadd.f32 %v4076_v18, %v3540_v6  ;;  %v4077_v23 = vpop.f32.mrb[26].mxu1 }
 0x304   :  { %v4078_v14 = vpop.f32.mrb[27].mxu1 }
 0x305   :  { %v4079_v48 = vadd.f32 %v4078_v14, %v4077_v23 }
 0x307   :  { %v3620_v50 = vadd.f32 %v4079_v48, %v3545_v13 }
 0x31f   :  { %v4112_v39 = vpop.f32.mrb[28].mxu1 }
 0x320   :  { %v4113_v29 = vpop.f32.mrb[29].mxu1 }
 0x321   :  { %v4114_v21 = vadd.f32 %v4113_v29, %v4112_v39 }
 0x323   :  { %v3690_v57 = vadd.f32 %v4114_v21, %v3615_v15  ;;  %v4115_v22 = vpop.f32.mrb[30].mxu1 }
 0x324   :  { %v4116_v12 = vpop.f32.mrb[31].mxu1 }
 0x325   :  { %v4117_v11 = vadd.f32 %v4116_v12, %v4115_v22 }
 0x327   :  { %v3695_v27 = vadd.f32 %v4117_v11, %v3620_v50 }
 0x33f   :  { %v4150_v26 = vpop.f32.mrb[32].mxu1 }
 0x340   :  { %v4151_v24 = vpop.f32.mrb[33].mxu1 }
 0x341   :  { %v4152_v42 = vadd.f32 %v4151_v24, %v4150_v26  ;;  %v85_v26 = vld [vmem:[#allocation8 + $0x3] ss:$4 sm:$0x7] }
 0x343   :  { %v3765_v25 = vadd.f32 %v4152_v42, %v3690_v57  ;;  %v4153_v31 = vpop.f32.mrb[34].mxu1  ;;  %v83_v57 = vld [vmem:[#allocation8 + $0x2] ss:$4 sm:$0x7] }
 0x344   :  { %v4154_v62 = vpop.f32.mrb[35].mxu1  ;;  %v3895_v22 = vrot.slane %v83_v57, %v7113_v52  ;;  %v3899_v12 = vrot.slane %v83_v57, %v7118_v55  ;;  %v3903_v11 = vrot.slane %v83_v57, %v7162_v30 }
 0x345   :  { %v4155_v9 = vadd.f32 %v4154_v62, %v4153_v31 }
 0x347   :  { %v3770_v37 = vadd.f32 %v4155_v9, %v3695_v27 }
 0x379   :  { %v4188_v28 = vpop.f32.mrb[36].mxu1 }
 0x37a   :  { %v4189_v20 = vpop.f32.mrb[37].mxu1 }
 0x37b   :  { %v4190_v32 = vadd.f32 %v4189_v20, %v4188_v28  ;;  %v3927_v20 = vrot.slane %v85_v26, %v7118_v55  ;;  %v6836_v55 = vld [vmem:[#allocation2 + $0x18] sm:$0xff] }
 0x37d   :  { %v4191_v0 = vpop.f32.mrb[38].mxu1  ;;  %v3840_v33 = vadd.f32 %v4190_v32, %v3765_v25  ;;  %v3931_v32 = vrot.slane %v85_v26, %v7162_v30  ;;  %v6837_v30 = vld [vmem:[#allocation2 + $0x20] sm:$0xff] }
 0x37e   :  { %v4192_v58 = vpop.f32.mrb[39].mxu1 }
 0x37f   :  { %v4193_v16 = vadd.f32 %v4192_v58, %v4191_v0 }
 0x381   :  { %v3845_v38 = vadd.f32 %v4193_v16, %v3770_v37  ;;  %v3923_v37 = vrot.slane %v85_v26, %v7113_v52  ;;  %v6833_v16 = vld [vmem:[#allocation2] sm:$0xff] }
 0x3b9   :  { %v3387_v34 = vpop.f32.mrb[8].mxu0 }
 0x3ba   :  { %v5370_v43 = vadd.f32 %v3387_v34, %v2924_v40  ;;  %v3389_v61 = vpop.f32.mrb[9].mxu0  ;;  %v6835_v34 = vld [vmem:[#allocation2 + $0x10] sm:$0xff] }
 0x3bb   :  { %v5371_v45 = vadd.f32 %v3389_v61, %v2928_v44 }
 0x3bd   :  { %v3393_v46 = vpop.f32.mrb[10].mxu0  ;;  %v3848_v35 = vadd.f32 %v5371_v45, %v5370_v43 }
 0x3be   :  { %v5372_v41 = vadd.f32 %v3393_v46, %v2924_v40  ;;  %v3395_v36 = vpop.f32.mrb[11].mxu0  ;;  %v6834_v40 = vld [vmem:[#allocation2 + $0x8] sm:$0xff] }
 0x3bf   :  { %v5373_v49 = vadd.f32 %v3395_v36, %v2928_v44  ;;  %v3849_v5 = vadd.f32 %v3848_v35, %v3840_v33 }
 0x3c1   :  { %v3852_v47 = vadd.f32 %v5373_v49, %v5372_v41  ;;  %3850 = vadd.xlane.f32.xlu0 %v3849_v5  ;;  %v6838_v5 = vld [vmem:[#allocation2 + $0x28] sm:$0xff] }
 0x3c3   :  { %v3853_v3 = vadd.f32 %v3852_v47, %v3845_v38 }
 0x3c5   :  { %3854 = vadd.xlane.f32.xlu0 %v3853_v3 }
 0x44e   :  { %v3851_v51 = vpop.xlane.xlu0 %3850 }
 0x44f   :  { %v3857_v54 = vmul.f32 0.0026041667, %v3851_v51 }
 0x451   :  { %v3859_v17 = vsub.f32 %v5370_v43, %v3857_v54  ;;  %v3860_v56 = vsub.f32 %v5371_v45, %v3857_v54  ;;  %v3861_v59 = vsub.f32 %v3840_v33, %v3857_v54 }
 0x452   :  { %v3855_v4 = vpop.xlane.xlu0 %3854 }
 0x453   :  { %v3858_v63 = vmul.f32 0.0026041667, %v3855_v4  ;;  %v3865_v1 = vmul.f32 %v3859_v17, %v3859_v17  ;;  %v3866_v2 = vmul.f32 %v3860_v56, %v3860_v56  ;;  %v3867_v6 = vmul.f32 %v3861_v59, %v3861_v59 }
 0x455   :  { %v3862_v7 = vsub.f32 %v5372_v41, %v3858_v63  ;;  %v3863_v8 = vsub.f32 %v5373_v49, %v3858_v63  ;;  %v3864_v60 = vsub.f32 %v3845_v38, %v3858_v63  ;;  %v3871_v19 = vadd.f32 %v3866_v2, %v3865_v1 }
 0x457   :  { %v3872_v13 = vadd.f32 %v3871_v19, %v3867_v6  ;;  %v3868_v10 = vmul.f32 %v3862_v7, %v3862_v7  ;;  %v3869_v53 = vmul.f32 %v3863_v8, %v3863_v8  ;;  %v3870_v18 = vmul.f32 %v3864_v60, %v3864_v60 }
 0x459   :  { %3873 = vadd.xlane.f32.xlu1 %v3872_v13  ;;  %v3875_v15 = vadd.f32 %v3869_v53, %v3868_v10 }
 0x45b   :  { %v3876_v23 = vadd.f32 %v3875_v15, %v3870_v18 }
 0x45d   :  { %3877 = vadd.xlane.f32.xlu1 %v3876_v23 }
 0x4e6   :  { %v3874_v14 = vpop.xlane.xlu1 %3873 }
 0x4e7   :  { %v3879_v48 = vmul.f32 0.0026041667, %v3874_v14 }
 0x4e9   :  { %v3881_v50 = vadd.f32 1e-05, %v3879_v48 }
 0x4ea   :  { %v3878_v39 = vpop.xlane.xlu1 %3877 }
 0x4eb   :  { %6822 = vrsqrt.f32 %v3881_v50  ;;  %v3880_v29 = vmul.f32 0.0026041667, %v3878_v39 }
 0x4ed   :  { %v3882_v21 = vadd.f32 1e-05, %v3880_v29 }
 0x4ef   :  { %6824 = vrsqrt.f32 %v3882_v21 }
 0x4f5   :  { %v6823_v27 = vpop.eup %6822 }
 0x4f6   :  { %v3885_v24 = vmul.f32 %v6823_v27, %v3859_v17  ;;  %v3886_v42 = vmul.f32 %v6823_v27, %v3860_v56  ;;  %v3887_v25 = vmul.f32 %v6823_v27, %v3861_v59 }
 0x4f8   :  { %v3907_v31 = vmul.f32 %v3895_v22, %v3885_v24  ;;  %v3908_v62 = vmul.f32 %v3899_v12, %v3886_v42  ;;  %v3909_v9 = vmul.f32 %v3903_v11, %v3887_v25 }
 0x4f9   :  { %v6825_v28 = vpop.eup %6824 }
 0x4fa   :  { %v3888_v0 = vmul.f32 %v6825_v28, %v3862_v7  ;;  %v3889_v33 = vmul.f32 %v6825_v28, %v3863_v8  ;;  %v3890_v58 = vmul.f32 %v6825_v28, %v3864_v60  ;;  %v3913_v38 = vadd.f32 %v6833_v16, %v3907_v31 }
 0x4fb   :  { %v3914_v44 = vadd.f32 %v6834_v40, %v3908_v62  ;;  %v3915_v43 = vadd.f32 %v6835_v34, %v3909_v9 }
 0x4fc   :  { %v3910_v61 = vmul.f32 %v3895_v22, %v3888_v0  ;;  %v3911_v45 = vmul.f32 %v3899_v12, %v3889_v33  ;;  %v3912_v46 = vmul.f32 %v3903_v11, %v3890_v58  ;;  %v3935_v35 = vadd.f32 %v3923_v37, %v3913_v38 }
 0x4fd   :  { %v3936_v41 = vadd.f32 %v3927_v20, %v3914_v44  ;;  %v3937_v52 = vadd.f32 %v3931_v32, %v3915_v43 }
 0x4fe   :  { %v3916_v36 = vadd.f32 %v6836_v55, %v3910_v61  ;;  %v3917_v49 = vadd.f32 %v6837_v30, %v3911_v45  ;;  %v3918_v47 = vadd.f32 %v6838_v5, %v3912_v46  ;;  %3941 = vst [vmem:[#allocation10] sm:$0xff] %v3935_v35 }
 0x4ff   :  { %3942 = vst [vmem:[#allocation10 + $0x8] sm:$0xff] %v3936_v41  ;;  %3943 = vst [vmem:[#allocation10 + $0x10] sm:$0xff] %v3937_v52 }
 0x500   :  { %v3938_v3 = vadd.f32 %v3923_v37, %v3916_v36  ;;  %v3939_v51 = vadd.f32 %v3927_v20, %v3917_v49  ;;  %v3940_v54 = vadd.f32 %v3931_v32, %v3918_v47 }
 0x502   :  { %3944 = vst [vmem:[#allocation10 + $0x18] sm:$0xff] %v3938_v3  ;;  %3945 = vst [vmem:[#allocation10 + $0x20] sm:$0xff] %v3939_v51 }
 0x503   :  { %3946 = vst [vmem:[#allocation10 + $0x28] sm:$0xff] %v3940_v54 }
 0x504   :  { %6938 = shalt.err (!%p6935_p8)
}
 0x505   :  { %s6939_s19 = scalar_lea.hbm %s7347_s4, 768 }
 0x506   :  { %p6940_p9 = scmp.ne.s32.totalorder %s7347_s4, %s6939_s19  ;;  %p6943_p10 = scmp.lt.u32.totalorder %s6939_s19, %s7347_s4 }
 0x508   :  { %p6945_p11 = pnand %p6943_p10, %p6940_p9 }
 0x50a   :  { %6948 = shalt.err (!%p6945_p11)
}
 0x50b   :  { %3958 = dma.vmem_to_hbm [thread:$0]  %s3953_s15, 768, %s7347_s4, [#allocation4], %s6961_s1, %s6961_s1, %s6962_s13  }
 0x50c   :  { %6955 = dma.done.wait [#allocation4], 768  }
 0x50d   :  { %6956 = vsyncadd [#allocation4], 4294966528 }
 0x50e   :  { %3962 = vsyncpa [#allocation3], 1 }
 0x50f   :  { %3963 = vsyncpa [#allocation6], 1 }
 0x510   :  { %3964 = vsyncpa [#allocation9], 1 }
 0x511   :  { %3965 = vsyncpa [#allocation4], 1 }

</bundles_post_ra>
